<compile_context>
chip_gen: v6e
topology: v6e:2x2x1
jax: 0.10.0
libtpu: 0.0.40
codegen_flags: <defaults>
</compile_context>

<pallas_src>
import math
import functools

import jax
import jax.numpy as jnp
from jax.experimental import pallas as pl
from jax.experimental.pallas import tpu as pltpu


# 48 MiB: above the 16/32 MiB scoped defaults, below v7x's 64 MiB physical VMEM.
VMEM_LIMIT_BYTES = 48 * 1024 * 1024


# ----------------------- fused encoder-layer kernel -------------------------

def _encoder_layer_kernel(*refs, nhead, eps, add_pe):
    # refs = [x, (pe,)] + 12 parameter refs + [out]
    if add_pe:
        x_ref, pe_ref = refs[0], refs[1]
        rest = refs[2:]
        x = x_ref[0] + pe_ref[0]               # fused positional-encoding add
    else:
        x_ref = refs[0]
        rest = refs[1:]
        x = x_ref[0]                           # (L, d) f32
    (wqkv_ref, bqkv_ref, wo_ref, bo_ref,
     w1_ref, b1_ref, w2_ref, b2_ref,
     g1_ref, bt1_ref, g2_ref, bt2_ref, o_ref) = rest

    L, d = x.shape
    hd = d // nhead
    scale = 1.0 / math.sqrt(hd)

    # --- QKV projection: one full-K (L, d) @ (d, 3d) MXU pass (bf16 in, f32 acc)
    qkv = (jnp.dot(x.astype(jnp.bfloat16), wqkv_ref[...],
                   preferred_element_type=jnp.float32)
           + bqkv_ref[...])                                        # (L, 3d) f32

    q = (qkv[:, :d] * scale).astype(jnp.bfloat16)                  # lane-aligned d-wide slices
    k = qkv[:, d:2 * d].astype(jnp.bfloat16)
    v = qkv[:, 2 * d:].astype(jnp.bfloat16)

    # --- multi-head attention (static per-head unroll of 2-D MXU dots).
    # dot_general with transposed-RHS contraction (flash-attention pattern):
    # no explicit K transpose materialized.
    trans_b_dims = (((1,), (1,)), ((), ()))
    heads = []
    for h in range(nhead):
        sl = slice(h * hd, (h + 1) * hd)
        qh, kh, vh = q[:, sl], k[:, sl], v[:, sl]
        s = jax.lax.dot_general(qh, kh, trans_b_dims,
                                preferred_element_type=jnp.float32)   # (L, L)
        s = s - jnp.max(s, axis=-1, keepdims=True)
        p = jnp.exp(s)
        p = p / jnp.sum(p, axis=-1, keepdims=True)                    # exact softmax (f32)
        heads.append(jnp.dot(p.astype(jnp.bfloat16), vh,
                             preferred_element_type=jnp.float32))     # (L, hd)

    # concat heads once, then a single full-K (L, d) @ (d, d) output projection
    attn = (jnp.dot(jnp.concatenate(heads, axis=-1).astype(jnp.bfloat16),
                    wo_ref[...], preferred_element_type=jnp.float32)
            + bo_ref[...])

    # --- add & layer-norm 1 (PyTorch post-norm, biased variance, f32) ---
    h1 = x + attn
    mu = jnp.mean(h1, axis=-1, keepdims=True)
    c = h1 - mu
    var = jnp.mean(c * c, axis=-1, keepdims=True)
    x1 = c * jax.lax.rsqrt(var + eps) * g1_ref[...] + bt1_ref[...]

    # --- feed forward (ReLU), bf16 MXU feeds / f32 elementwise ---
    ff = jnp.maximum(
        jnp.dot(x1.astype(jnp.bfloat16), w1_ref[...],
                preferred_element_type=jnp.float32) + b1_ref[...], 0.0)
    ff = jnp.dot(ff.astype(jnp.bfloat16), w2_ref[...],
                 preferred_element_type=jnp.float32) + b2_ref[...]

    # --- add & layer-norm 2 ---
    h2 = x1 + ff
    mu2 = jnp.mean(h2, axis=-1, keepdims=True)
    c2 = h2 - mu2
    var2 = jnp.mean(c2 * c2, axis=-1, keepdims=True)
    x2 = c2 * jax.lax.rsqrt(var2 + eps) * g2_ref[...] + bt2_ref[...]

    o_ref[0] = x2.astype(o_ref.dtype)


def encoder_layer(x, p, nhead, pe=None, eps=1e-5):
    """One fused TransformerEncoderLayer (norm_first=False, relu, eval mode).

    Grid = batch: one batch element (L rows of activation) per grid step,
    pipelined and megacore-parallel; the 12 weight/bias tensors stay resident
    (constant block index) across the whole grid.
    """
    # TODO(synk): src_mask (additive attention mask) not plumbed into the fused kernel.
    N, L, d = x.shape

    inputs = [x]
    specs = [pl.BlockSpec((1, L, d), lambda b: (b, 0, 0))]
    if pe is not None:
        inputs.append(pe)
        specs.append(pl.BlockSpec((1, L, d), lambda b: (0, 0, 0)))

    weights = [p["wqkv"], p["bqkv"], p["wo"], p["bo"],
               p["w1"], p["b1"], p["w2"], p["b2"],
               p["g1"], p["bt1"], p["g2"], p["bt2"]]
    inputs += weights
    for w in weights:                        # all 2-D, full-extent resident blocks
        specs.append(pl.BlockSpec(w.shape, lambda b: (0, 0)))

    return pl.pallas_call(
        functools.partial(_encoder_layer_kernel, nhead=nhead, eps=eps,
                          add_pe=pe is not None),
        out_shape=jax.ShapeDtypeStruct((N, L, d), x.dtype),
        grid_spec=pltpu.PrefetchScalarGridSpec(
            num_scalar_prefetch=0,
            grid=(N,),
            in_specs=specs,
            out_specs=pl.BlockSpec((1, L, d), lambda b: (b, 0, 0))),
        compiler_params=pltpu.CompilerParams(
            dimension_semantics=("parallel",),
            vmem_limit_bytes=VMEM_LIMIT_BYTES),
    )(*inputs)


# ------------------ vocab / logits projection (re-ordering) -----------------

def _logits_kernel(x_ref, w_ref, b_ref, o_ref):
    x = x_ref[0].astype(jnp.bfloat16)                      # (tl, d)
    y = jnp.dot(x, w_ref[...], preferred_element_type=jnp.float32)
    o_ref[...] = (y + b_ref[...]).astype(o_ref.dtype)


def output_projection(x, w, b, *, tl=256, tv=2048):
    """logits = x @ w + b, emitted directly in (seq, batch, vocab) order.

    x is (N, L, d); the output is written as a lane-dense (L, N*V) slab via the
    out_specs index_map (so no XLA transpose of the logits), then reshaped for
    free to (L, N, V).  Weights are bf16, accumulation is f32.
    """
    N, L, d = x.shape
    V = w.shape[1]
    tl = min(tl, L)
    tv = min(tv, V)
    if V % tv != 0:       # keep each batch element's vocab segment block-aligned
        tv = V
    nl = pl.cdiv(L, tl)
    nv = V // tv

    out = pl.pallas_call(
        _logits_kernel,
        out_shape=jax.ShapeDtypeStruct((L, N * V), jnp.float32),
        grid_spec=pltpu.PrefetchScalarGridSpec(
            num_scalar_prefetch=0,
            grid=(nl, N, nv),
            in_specs=[
                pl.BlockSpec((1, tl, d), lambda l, n, v: (n, l, 0)),
                pl.BlockSpec((d, tv),    lambda l, n, v: (0, v)),
                pl.BlockSpec((1, tv),    lambda l, n, v: (0, v)),
            ],
            out_specs=pl.BlockSpec((tl, tv), lambda l, n, v: (l, n * nv + v))),
        compiler_params=pltpu.CompilerParams(
            dimension_semantics=("parallel", "parallel", "parallel"),
            vmem_limit_bytes=VMEM_LIMIT_BYTES),
    )(x, w, b)
    return out.reshape(L, N, V)


# --------------------------- parameters / model -----------------------------

def make_positional_encoding(d_model, max_len=512):
    position = jnp.arange(max_len, dtype=jnp.float32)[:, None]
    div_term = jnp.exp(jnp.arange(0, d_model, 2, dtype=jnp.float32)
                       * (-math.log(10000.0) / d_model))
    ang = position * div_term                                   # (max_len, d/2)
    pe = jnp.zeros((max_len, d_model), dtype=jnp.float32)
    pe = pe.at[:, 0::2].set(jnp.sin(ang))
    pe = pe.at[:, 1::2].set(jnp.cos(ang))
    return pe                                                   # (max_len, d)


def init_params(key, vocab_size, d_model, nhead, num_layers, d_ff):
    initrange = 0.1

    def uniform(k, shape, bound, dtype=jnp.float32):
        return jax.random.uniform(k, shape, jnp.float32, -bound, bound).astype(dtype)

    keys = jax.random.split(key, 2 + num_layers)
    params = {
        # sqrt(d_model) scale folded into the table (one-time host cost)
        "embedding": uniform(keys[0], (vocab_size, d_model), initrange)
                     * math.sqrt(d_model),
        # weights stored (in_features, out_features) and in bf16 -> MXU-native
        "out_w": uniform(keys[1], (d_model, vocab_size), initrange, jnp.bfloat16),
        "out_b": jnp.zeros((1, vocab_size), jnp.float32),
        "pe": make_positional_encoding(d_model),
        "layers": [],
    }
    bound_d = 1.0 / math.sqrt(d_model)
    bound_ff = 1.0 / math.sqrt(d_ff)
    for l in range(num_layers):
        lk = jax.random.split(keys[2 + l], 4)
        params["layers"].append({
            "wqkv": uniform(lk[0], (d_model, 3 * d_model), bound_d, jnp.bfloat16),
            "bqkv": jnp.zeros((1, 3 * d_model), jnp.float32),
            "wo":   uniform(lk[1], (d_model, d_model), bound_d, jnp.bfloat16),
            "bo":   jnp.zeros((1, d_model), jnp.float32),
            "w1":   uniform(lk[2], (d_model, d_ff), bound_d, jnp.bfloat16),
            "b1":   jnp.zeros((1, d_ff), jnp.float32),
            "w2":   uniform(lk[3], (d_ff, d_model), bound_ff, jnp.bfloat16),
            "b2":   jnp.zeros((1, d_model), jnp.float32),
            "g1":   jnp.ones((1, d_model), jnp.float32),
            "bt1":  jnp.zeros((1, d_model), jnp.float32),
            "g2":   jnp.ones((1, d_model), jnp.float32),
            "bt2":  jnp.zeros((1, d_model), jnp.float32),
        })
    return params


def forward(params, src, nhead):
    # src: (seq, batch) int32 token ids (PyTorch batch_first=False convention)
    L, N = src.shape

    # Embedding gather is XLA glue; sqrt(d_model) already folded into the table.
    x = jnp.take(params["embedding"], src.T, axis=0)            # (N, L, d) f32
    pe = params["pe"][:L][None]                                 # (1, L, d)

    layers = params["layers"]
    # PE add fused into the first layer's kernel input path.
    x = encoder_layer(x, layers[0], nhead, pe=pe)
    for p in layers[1:]:
        x = encoder_layer(x, p, nhead)

    # Logits emitted directly in (seq, batch, vocab) order — no trailing transpose.
    return output_projection(x, params["out_w"], params["out_b"])


# --------------------------------- main -------------------------------------

if __name__ == "__main__":
    VOCAB = 256
    D_MODEL = 128      # lane-dense (multiple of 128 lanes)
    NHEAD = 4
    NUM_LAYERS = 2
    D_FF = 256
    SEQ = 16
    BATCH = 2

    key = jax.random.PRNGKey(0)
    pkey, dkey = jax.random.split(key)
    params = init_params(pkey, VOCAB, D_MODEL, NHEAD, NUM_LAYERS, D_FF)
    src = jax.random.randint(dkey, (SEQ, BATCH), 0, VOCAB, dtype=jnp.int32)

    fwd = jax.jit(functools.partial(forward, nhead=NHEAD))
    out = jax.block_until_ready(fwd(params, src))

    assert out.shape == (SEQ, BATCH, VOCAB)
    assert bool(jnp.all(jnp.isfinite(out)))
    print("KERNEL_OK")
</pallas_src>

<mosaic_0001>
module attributes {stable_mosaic.version = 11 : i64} {
  func.func @_logits_kernel(%arg0: i32, %arg1: i32, %arg2: i32, %arg3: memref<1x16x128xf32, #tpu.memory_space<vmem>>, %arg4: memref<128x256xbf16, #tpu.memory_space<vmem>>, %arg5: memref<1x256xf32, #tpu.memory_space<vmem>>, %arg6: memref<16x256xf32, #tpu.memory_space<vmem>>) attributes {dimension_semantics = [#tpu.dimension_semantics<parallel>, #tpu.dimension_semantics<parallel>, #tpu.dimension_semantics<parallel>], iteration_bounds = array<i64: 1, 2, 1>, scalar_prefetch = 0 : i64, scratch_operands = 0 : i64, tpu.core_type = #tpu.core_type<tc>, window_params = [{transform_indices = @transform_0, window_bounds = array<i64: 1, 16, 128>}, {transform_indices = @transform_1, window_bounds = array<i64: 128, 256>}, {transform_indices = @transform_2, window_bounds = array<i64: 1, 256>}, {transform_indices = @transform_3, window_bounds = array<i64: 16, 256>}]} {
    %c0 = arith.constant 0 : index
    %c0_0 = arith.constant 0 : index
    %c0_1 = arith.constant 0 : index
    %0 = vector.load %arg3[%c0, %c0_0, %c0_1] : memref<1x16x128xf32, #tpu.memory_space<vmem>>, vector<1x16x128xf32>
    %1 = vector.shape_cast %0 : vector<1x16x128xf32> to vector<16x128xf32>
    %2 = arith.truncf %1 : vector<16x128xf32> to vector<16x128xbf16>
    %c0_2 = arith.constant 0 : index
    %c0_3 = arith.constant 0 : index
    %3 = vector.load %arg4[%c0_2, %c0_3] : memref<128x256xbf16, #tpu.memory_space<vmem>>, vector<128x256xbf16>
    %cst = arith.constant dense<0.000000e+00> : vector<16x256xf32>
    %4 = tpu.matmul %2, %3, %cst {dimension_numbers = #tpu.dot_dimension_numbers<[1], [0], [0], [1], [0, 0, 1, 1], [], []>} : vector<16x128xbf16>, vector<128x256xbf16>, vector<16x256xf32> -> vector<16x256xf32>
    %c0_4 = arith.constant 0 : index
    %c0_5 = arith.constant 0 : index
    %5 = vector.load %arg5[%c0_4, %c0_5] : memref<1x256xf32, #tpu.memory_space<vmem>>, vector<1x256xf32>
    %6 = vector.broadcast %5 : vector<1x256xf32> to vector<16x256xf32>
    %7 = arith.addf %4, %6 : vector<16x256xf32>
    %c0_6 = arith.constant 0 : index
    %c0_7 = arith.constant 0 : index
    %8 = vector.load %arg6[%c0_6, %c0_7] : memref<16x256xf32, #tpu.memory_space<vmem>>, vector<16x256xf32>
    tpu.vector_store %arg6[%c0_6, %c0_7], %7 {strides = array<i32>} : memref<16x256xf32, #tpu.memory_space<vmem>>, vector<16x256xf32>,
    return
  }
  func.func @transform_0(%arg0: i32, %arg1: i32, %arg2: i32) -> (i32, i32, i32) {
    %c0_i32 = arith.constant 0 : i32
    %c0_i32_0 = arith.constant 0 : i32
    return %arg1, %arg0, %c0_i32 : i32, i32, i32
  }
  func.func @transform_1(%arg0: i32, %arg1: i32, %arg2: i32) -> (i32, i32) {
    %c0_i32 = arith.constant 0 : i32
    %c0_i32_0 = arith.constant 0 : i32
    return %c0_i32, %arg2 : i32, i32
  }
  func.func @transform_2(%arg0: i32, %arg1: i32, %arg2: i32) -> (i32, i32) {
    %c0_i32 = arith.constant 0 : i32
    %c0_i32_0 = arith.constant 0 : i32
    return %c0_i32, %arg2 : i32, i32
  }
  func.func @transform_3(%arg0: i32, %arg1: i32, %arg2: i32) -> (i32, i32) {
    %c1_i32 = arith.constant 1 : i32
    %0 = arith.muli %arg1, %c1_i32 : i32
    %1 = arith.addi %0, %arg2 : i32
    %c0_i32 = arith.constant 0 : i32
    return %arg0, %1 : i32, i32
  }
}

module attributes {stable_mosaic.version = 11 : i64} {
  func.func @_encoder_layer_kernel(%arg0: i32, %arg1: memref<1x16x128xf32, #tpu.memory_space<vmem>>, %arg2: memref<1x16x128xf32, #tpu.memory_space<vmem>>, %arg3: memref<128x384xbf16, #tpu.memory_space<vmem>>, %arg4: memref<1x384xf32, #tpu.memory_space<vmem>>, %arg5: memref<128x128xbf16, #tpu.memory_space<vmem>>, %arg6: memref<1x128xf32, #tpu.memory_space<vmem>>, %arg7: memref<128x256xbf16, #tpu.memory_space<vmem>>, %arg8: memref<1x256xf32, #tpu.memory_space<vmem>>, %arg9: memref<256x128xbf16, #tpu.memory_space<vmem>>, %arg10: memref<1x128xf32, #tpu.memory_space<vmem>>, %arg11: memref<1x128xf32, #tpu.memory_space<vmem>>, %arg12: memref<1x128xf32, #tpu.memory_space<vmem>>, %arg13: memref<1x128xf32, #tpu.memory_space<vmem>>, %arg14: memref<1x128xf32, #tpu.memory_space<vmem>>, %arg15: memref<1x16x128xf32, #tpu.memory_space<vmem>>) attributes {dimension_semantics = [#tpu.dimension_semantics<parallel>], iteration_bounds = array<i64: 2>, scalar_prefetch = 0 : i64, scratch_operands = 0 : i64, tpu.core_type = #tpu.core_type<tc>, window_params = [{transform_indices = @transform_0, window_bounds = array<i64: 1, 16, 128>}, {pipeline_mode = #tpu.pipeline_mode<synchronous>, transform_indices = @transform_1, window_bounds = array<i64: 1, 16, 128>}, {pipeline_mode = #tpu.pipeline_mode<synchronous>, transform_indices = @transform_2, window_bounds = array<i64: 128, 384>}, {pipeline_mode = #tpu.pipeline_mode<synchronous>, transform_indices = @transform_3, window_bounds = array<i64: 1, 384>}, {pipeline_mode = #tpu.pipeline_mode<synchronous>, transform_indices = @transform_4, window_bounds = array<i64: 128, 128>}, {pipeline_mode = #tpu.pipeline_mode<synchronous>, transform_indices = @transform_5, window_bounds = array<i64: 1, 128>}, {pipeline_mode = #tpu.pipeline_mode<synchronous>, transform_indices = @transform_6, window_bounds = array<i64: 128, 256>}, {pipeline_mode = #tpu.pipeline_mode<synchronous>, transform_indices = @transform_7, window_bounds = array<i64: 1, 256>}, {pipeline_mode = #tpu.pipeline_mode<synchronous>, transform_indices = @transform_8, window_bounds = array<i64: 256, 128>}, {pipeline_mode = #tpu.pipeline_mode<synchronous>, transform_indices = @transform_9, window_bounds = array<i64: 1, 128>}, {pipeline_mode = #tpu.pipeline_mode<synchronous>, transform_indices = @transform_10, window_bounds = array<i64: 1, 128>}, {pipeline_mode = #tpu.pipeline_mode<synchronous>, transform_indices = @transform_11, window_bounds = array<i64: 1, 128>}, {pipeline_mode = #tpu.pipeline_mode<synchronous>, transform_indices = @transform_12, window_bounds = array<i64: 1, 128>}, {pipeline_mode = #tpu.pipeline_mode<synchronous>, transform_indices = @transform_13, window_bounds = array<i64: 1, 128>}, {transform_indices = @transform_14, window_bounds = array<i64: 1, 16, 128>}]} {
    %c0 = arith.constant 0 : index
    %c0_0 = arith.constant 0 : index
    %c0_1 = arith.constant 0 : index
    %0 = vector.load %arg1[%c0, %c0_0, %c0_1] : memref<1x16x128xf32, #tpu.memory_space<vmem>>, vector<1x16x128xf32>
    %1 = vector.shape_cast %0 : vector<1x16x128xf32> to vector<16x128xf32>
    %c0_2 = arith.constant 0 : index
    %c0_3 = arith.constant 0 : index
    %c0_4 = arith.constant 0 : index
    %2 = vector.load %arg2[%c0_2, %c0_3, %c0_4] : memref<1x16x128xf32, #tpu.memory_space<vmem>>, vector<1x16x128xf32>
    %3 = vector.shape_cast %2 : vector<1x16x128xf32> to vector<16x128xf32>
    %4 = arith.addf %1, %3 : vector<16x128xf32>
    %5 = arith.truncf %4 : vector<16x128xf32> to vector<16x128xbf16>
    %c0_5 = arith.constant 0 : index
    %c0_6 = arith.constant 0 : index
    %6 = vector.load %arg3[%c0_5, %c0_6] : memref<128x384xbf16, #tpu.memory_space<vmem>>, vector<128x384xbf16>
    %cst = arith.constant dense<0.000000e+00> : vector<16x384xf32>
    %7 = tpu.matmul %5, %6, %cst {dimension_numbers = #tpu.dot_dimension_numbers<[1], [0], [0], [1], [0, 0, 1, 1], [], []>} : vector<16x128xbf16>, vector<128x384xbf16>, vector<16x384xf32> -> vector<16x384xf32>
    %c0_7 = arith.constant 0 : index
    %c0_8 = arith.constant 0 : index
    %8 = vector.load %arg4[%c0_7, %c0_8] : memref<1x384xf32, #tpu.memory_space<vmem>>, vector<1x384xf32>
    %9 = vector.broadcast %8 : vector<1x384xf32> to vector<16x384xf32>
    %10 = arith.addf %7, %9 : vector<16x384xf32>
    %11 = vector.extract_strided_slice %10 {offsets = [0, 0], sizes = [16, 128], strides = [1, 1]} : vector<16x384xf32> to vector<16x128xf32>
    %cst_9 = arith.constant 0.176776692 : f32
    %12 = vector.broadcast %cst_9 : f32 to vector<16x128xf32>
    %13 = arith.mulf %11, %12 : vector<16x128xf32>
    %14 = arith.truncf %13 : vector<16x128xf32> to vector<16x128xbf16>
    %15 = vector.extract_strided_slice %10 {offsets = [0, 128], sizes = [16, 128], strides = [1, 1]} : vector<16x384xf32> to vector<16x128xf32>
    %16 = arith.truncf %15 : vector<16x128xf32> to vector<16x128xbf16>
    %17 = vector.extract_strided_slice %10 {offsets = [0, 256], sizes = [16, 128], strides = [1, 1]} : vector<16x384xf32> to vector<16x128xf32>
    %18 = arith.truncf %17 : vector<16x128xf32> to vector<16x128xbf16>
    %19 = vector.extract_strided_slice %14 {offsets = [0, 0], sizes = [16, 32], strides = [1, 1]} : vector<16x128xbf16> to vector<16x32xbf16>
    %20 = vector.extract_strided_slice %16 {offsets = [0, 0], sizes = [16, 32], strides = [1, 1]} : vector<16x128xbf16> to vector<16x32xbf16>
    %21 = vector.extract_strided_slice %18 {offsets = [0, 0], sizes = [16, 32], strides = [1, 1]} : vector<16x128xbf16> to vector<16x32xbf16>
    %cst_10 = arith.constant dense<0.000000e+00> : vector<16x16xf32>
    %22 = tpu.matmul %19, %20, %cst_10 {dimension_numbers = #tpu.dot_dimension_numbers<[1], [1], [0], [0], [0, 0, 1, 0], [], []>} : vector<16x32xbf16>, vector<16x32xbf16>, vector<16x16xf32> -> vector<16x16xf32>
    %cst_11 = arith.constant dense<0xFF800000> : vector<16xf32>
    %23 = vector.multi_reduction <maximumf>, %22, %cst_11 [1] : vector<16x16xf32> to vector<16xf32>
    %24 = vector.shape_cast %23 : vector<16xf32> to vector<16x1xf32>
    %25 = vector.broadcast %24 : vector<16x1xf32> to vector<16x16xf32>
    %26 = arith.subf %22, %25 : vector<16x16xf32>
    %27 = math.exp %26 : vector<16x16xf32>
    %cst_12 = arith.constant dense<0.000000e+00> : vector<16xf32>
    %28 = vector.multi_reduction <add>, %27, %cst_12 [1] : vector<16x16xf32> to vector<16xf32>
    %29 = vector.shape_cast %28 : vector<16xf32> to vector<16x1xf32>
    %30 = vector.broadcast %29 : vector<16x1xf32> to vector<16x16xf32>
    %31 = arith.divf %27, %30 : vector<16x16xf32>
    %32 = arith.truncf %31 : vector<16x16xf32> to vector<16x16xbf16>
    %cst_13 = arith.constant dense<0.000000e+00> : vector<16x32xf32>
    %33 = tpu.matmul %32, %21, %cst_13 {dimension_numbers = #tpu.dot_dimension_numbers<[1], [0], [0], [1], [0, 0, 1, 1], [], []>} : vector<16x16xbf16>, vector<16x32xbf16>, vector<16x32xf32> -> vector<16x32xf32>
    %34 = vector.extract_strided_slice %14 {offsets = [0, 32], sizes = [16, 32], strides = [1, 1]} : vector<16x128xbf16> to vector<16x32xbf16>
    %35 = vector.extract_strided_slice %16 {offsets = [0, 32], sizes = [16, 32], strides = [1, 1]} : vector<16x128xbf16> to vector<16x32xbf16>
    %36 = vector.extract_strided_slice %18 {offsets = [0, 32], sizes = [16, 32], strides = [1, 1]} : vector<16x128xbf16> to vector<16x32xbf16>
    %cst_14 = arith.constant dense<0.000000e+00> : vector<16x16xf32>
    %37 = tpu.matmul %34, %35, %cst_14 {dimension_numbers = #tpu.dot_dimension_numbers<[1], [1], [0], [0], [0, 0, 1, 0], [], []>} : vector<16x32xbf16>, vector<16x32xbf16>, vector<16x16xf32> -> vector<16x16xf32>
    %cst_15 = arith.constant dense<0xFF800000> : vector<16xf32>
    %38 = vector.multi_reduction <maximumf>, %37, %cst_15 [1] : vector<16x16xf32> to vector<16xf32>
    %39 = vector.shape_cast %38 : vector<16xf32> to vector<16x1xf32>
    %40 = vector.broadcast %39 : vector<16x1xf32> to vector<16x16xf32>
    %41 = arith.subf %37, %40 : vector<16x16xf32>
    %42 = math.exp %41 : vector<16x16xf32>
    %cst_16 = arith.constant dense<0.000000e+00> : vector<16xf32>
    %43 = vector.multi_reduction <add>, %42, %cst_16 [1] : vector<16x16xf32> to vector<16xf32>
    %44 = vector.shape_cast %43 : vector<16xf32> to vector<16x1xf32>
    %45 = vector.broadcast %44 : vector<16x1xf32> to vector<16x16xf32>
    %46 = arith.divf %42, %45 : vector<16x16xf32>
    %47 = arith.truncf %46 : vector<16x16xf32> to vector<16x16xbf16>
    %cst_17 = arith.constant dense<0.000000e+00> : vector<16x32xf32>
    %48 = tpu.matmul %47, %36, %cst_17 {dimension_numbers = #tpu.dot_dimension_numbers<[1], [0], [0], [1], [0, 0, 1, 1], [], []>} : vector<16x16xbf16>, vector<16x32xbf16>, vector<16x32xf32> -> vector<16x32xf32>
    %49 = vector.extract_strided_slice %14 {offsets = [0, 64], sizes = [16, 32], strides = [1, 1]} : vector<16x128xbf16> to vector<16x32xbf16>
    %50 = vector.extract_strided_slice %16 {offsets = [0, 64], sizes = [16, 32], strides = [1, 1]} : vector<16x128xbf16> to vector<16x32xbf16>
    %51 = vector.extract_strided_slice %18 {offsets = [0, 64], sizes = [16, 32], strides = [1, 1]} : vector<16x128xbf16> to vector<16x32xbf16>
    %cst_18 = arith.constant dense<0.000000e+00> : vector<16x16xf32>
    %52 = tpu.matmul %49, %50, %cst_18 {dimension_numbers = #tpu.dot_dimension_numbers<[1], [1], [0], [0], [0, 0, 1, 0], [], []>} : vector<16x32xbf16>, vector<16x32xbf16>, vector<16x16xf32> -> vector<16x16xf32>
    %cst_19 = arith.constant dense<0xFF800000> : vector<16xf32>
    %53 = vector.multi_reduction <maximumf>, %52, %cst_19 [1] : vector<16x16xf32> to vector<16xf32>
    %54 = vector.shape_cast %53 : vector<16xf32> to vector<16x1xf32>
    %55 = vector.broadcast %54 : vector<16x1xf32> to vector<16x16xf32>
    %56 = arith.subf %52, %55 : vector<16x16xf32>
    %57 = math.exp %56 : vector<16x16xf32>
    %cst_20 = arith.constant dense<0.000000e+00> : vector<16xf32>
    %58 = vector.multi_reduction <add>, %57, %cst_20 [1] : vector<16x16xf32> to vector<16xf32>
    %59 = vector.shape_cast %58 : vector<16xf32> to vector<16x1xf32>
    %60 = vector.broadcast %59 : vector<16x1xf32> to vector<16x16xf32>
    %61 = arith.divf %57, %60 : vector<16x16xf32>
    %62 = arith.truncf %61 : vector<16x16xf32> to vector<16x16xbf16>
    %cst_21 = arith.constant dense<0.000000e+00> : vector<16x32xf32>
    %63 = tpu.matmul %62, %51, %cst_21 {dimension_numbers = #tpu.dot_dimension_numbers<[1], [0], [0], [1], [0, 0, 1, 1], [], []>} : vector<16x16xbf16>, vector<16x32xbf16>, vector<16x32xf32> -> vector<16x32xf32>
    %64 = vector.extract_strided_slice %14 {offsets = [0, 96], sizes = [16, 32], strides = [1, 1]} : vector<16x128xbf16> to vector<16x32xbf16>
    %65 = vector.extract_strided_slice %16 {offsets = [0, 96], sizes = [16, 32], strides = [1, 1]} : vector<16x128xbf16> to vector<16x32xbf16>
    %66 = vector.extract_strided_slice %18 {offsets = [0, 96], sizes = [16, 32], strides = [1, 1]} : vector<16x128xbf16> to vector<16x32xbf16>
    %cst_22 = arith.constant dense<0.000000e+00> : vector<16x16xf32>
    %67 = tpu.matmul %64, %65, %cst_22 {dimension_numbers = #tpu.dot_dimension_numbers<[1], [1], [0], [0], [0, 0, 1, 0], [], []>} : vector<16x32xbf16>, vector<16x32xbf16>, vector<16x16xf32> -> vector<16x16xf32>
    %cst_23 = arith.constant dense<0xFF800000> : vector<16xf32>
    %68 = vector.multi_reduction <maximumf>, %67, %cst_23 [1] : vector<16x16xf32> to vector<16xf32>
    %69 = vector.shape_cast %68 : vector<16xf32> to vector<16x1xf32>
    %70 = vector.broadcast %69 : vector<16x1xf32> to vector<16x16xf32>
    %71 = arith.subf %67, %70 : vector<16x16xf32>
    %72 = math.exp %71 : vector<16x16xf32>
    %cst_24 = arith.constant dense<0.000000e+00> : vector<16xf32>
    %73 = vector.multi_reduction <add>, %72, %cst_24 [1] : vector<16x16xf32> to vector<16xf32>
    %74 = vector.shape_cast %73 : vector<16xf32> to vector<16x1xf32>
    %75 = vector.broadcast %74 : vector<16x1xf32> to vector<16x16xf32>
    %76 = arith.divf %72, %75 : vector<16x16xf32>
    %77 = arith.truncf %76 : vector<16x16xf32> to vector<16x16xbf16>
    %cst_25 = arith.constant dense<0.000000e+00> : vector<16x32xf32>
    %78 = tpu.matmul %77, %66, %cst_25 {dimension_numbers = #tpu.dot_dimension_numbers<[1], [0], [0], [1], [0, 0, 1, 1], [], []>} : vector<16x16xbf16>, vector<16x32xbf16>, vector<16x32xf32> -> vector<16x32xf32>
    %79 = tpu.concatenate %33, %48, %63, %78 in 1 : vector<16x32xf32>, vector<16x32xf32>, vector<16x32xf32>, vector<16x32xf32> -> vector<16x128xf32>
    %80 = arith.truncf %79 : vector<16x128xf32> to vector<16x128xbf16>
    %c0_26 = arith.constant 0 : index
    %c0_27 = arith.constant 0 : index
    %81 = vector.load %arg5[%c0_26, %c0_27] : memref<128x128xbf16, #tpu.memory_space<vmem>>, vector<128x128xbf16>
    %cst_28 = arith.constant dense<0.000000e+00> : vector<16x128xf32>
    %82 = tpu.matmul %80, %81, %cst_28 {dimension_numbers = #tpu.dot_dimension_numbers<[1], [0], [0], [1], [0, 0, 1, 1], [], []>} : vector<16x128xbf16>, vector<128x128xbf16>, vector<16x128xf32> -> vector<16x128xf32>
    %c0_29 = arith.constant 0 : index
    %c0_30 = arith.constant 0 : index
    %83 = vector.load %arg6[%c0_29, %c0_30] : memref<1x128xf32, #tpu.memory_space<vmem>>, vector<1x128xf32>
    %84 = vector.broadcast %83 : vector<1x128xf32> to vector<16x128xf32>
    %85 = arith.addf %82, %84 : vector<16x128xf32>
    %86 = arith.addf %4, %85 : vector<16x128xf32>
    %cst_31 = arith.constant dense<0.000000e+00> : vector<16xf32>
    %87 = vector.multi_reduction <add>, %86, %cst_31 [1] : vector<16x128xf32> to vector<16xf32>
    %88 = vector.shape_cast %87 : vector<16xf32> to vector<16x1xf32>
    %cst_32 = arith.constant 1.280000e+02 : f32
    %89 = vector.broadcast %cst_32 : f32 to vector<16x1xf32>
    %90 = arith.divf %88, %89 : vector<16x1xf32>
    %91 = vector.broadcast %90 : vector<16x1xf32> to vector<16x128xf32>
    %92 = arith.subf %86, %91 : vector<16x128xf32>
    %93 = arith.mulf %92, %92 : vector<16x128xf32>
    %cst_33 = arith.constant dense<0.000000e+00> : vector<16xf32>
    %94 = vector.multi_reduction <add>, %93, %cst_33 [1] : vector<16x128xf32> to vector<16xf32>
    %95 = vector.shape_cast %94 : vector<16xf32> to vector<16x1xf32>
    %cst_34 = arith.constant 1.280000e+02 : f32
    %96 = vector.broadcast %cst_34 : f32 to vector<16x1xf32>
    %97 = arith.divf %95, %96 : vector<16x1xf32>
    %cst_35 = arith.constant 9.99999974E-6 : f32
    %98 = vector.broadcast %cst_35 : f32 to vector<16x1xf32>
    %99 = arith.addf %97, %98 : vector<16x1xf32>
    %100 = math.rsqrt %99 : vector<16x1xf32>
    %101 = vector.broadcast %100 : vector<16x1xf32> to vector<16x128xf32>
    %102 = arith.mulf %92, %101 : vector<16x128xf32>
    %c0_36 = arith.constant 0 : index
    %c0_37 = arith.constant 0 : index
    %103 = vector.load %arg11[%c0_36, %c0_37] : memref<1x128xf32, #tpu.memory_space<vmem>>, vector<1x128xf32>
    %104 = vector.broadcast %103 : vector<1x128xf32> to vector<16x128xf32>
    %105 = arith.mulf %102, %104 : vector<16x128xf32>
    %c0_38 = arith.constant 0 : index
    %c0_39 = arith.constant 0 : index
    %106 = vector.load %arg12[%c0_38, %c0_39] : memref<1x128xf32, #tpu.memory_space<vmem>>, vector<1x128xf32>
    %107 = vector.broadcast %106 : vector<1x128xf32> to vector<16x128xf32>
    %108 = arith.addf %105, %107 : vector<16x128xf32>
    %109 = arith.truncf %108 : vector<16x128xf32> to vector<16x128xbf16>
    %c0_40 = arith.constant 0 : index
    %c0_41 = arith.constant 0 : index
    %110 = vector.load %arg7[%c0_40, %c0_41] : memref<128x256xbf16, #tpu.memory_space<vmem>>, vector<128x256xbf16>
    %cst_42 = arith.constant dense<0.000000e+00> : vector<16x256xf32>
    %111 = tpu.matmul %109, %110, %cst_42 {dimension_numbers = #tpu.dot_dimension_numbers<[1], [0], [0], [1], [0, 0, 1, 1], [], []>} : vector<16x128xbf16>, vector<128x256xbf16>, vector<16x256xf32> -> vector<16x256xf32>
    %c0_43 = arith.constant 0 : index
    %c0_44 = arith.constant 0 : index
    %112 = vector.load %arg8[%c0_43, %c0_44] : memref<1x256xf32, #tpu.memory_space<vmem>>, vector<1x256xf32>
    %113 = vector.broadcast %112 : vector<1x256xf32> to vector<16x256xf32>
    %114 = arith.addf %111, %113 : vector<16x256xf32>
    %cst_45 = arith.constant 0.000000e+00 : f32
    %115 = vector.broadcast %cst_45 : f32 to vector<16x256xf32>
    %116 = arith.maximumf %114, %115 : vector<16x256xf32>
    %117 = arith.truncf %116 : vector<16x256xf32> to vector<16x256xbf16>
    %c0_46 = arith.constant 0 : index
    %c0_47 = arith.constant 0 : index
    %118 = vector.load %arg9[%c0_46, %c0_47] : memref<256x128xbf16, #tpu.memory_space<vmem>>, vector<256x128xbf16>
    %cst_48 = arith.constant dense<0.000000e+00> : vector<16x128xf32>
    %119 = tpu.matmul %117, %118, %cst_48 {dimension_numbers = #tpu.dot_dimension_numbers<[1], [0], [0], [1], [0, 0, 1, 1], [], []>} : vector<16x256xbf16>, vector<256x128xbf16>, vector<16x128xf32> -> vector<16x128xf32>
    %c0_49 = arith.constant 0 : index
    %c0_50 = arith.constant 0 : index
    %120 = vector.load %arg10[%c0_49, %c0_50] : memref<1x128xf32, #tpu.memory_space<vmem>>, vector<1x128xf32>
    %121 = vector.broadcast %120 : vector<1x128xf32> to vector<16x128xf32>
    %122 = arith.addf %119, %121 : vector<16x128xf32>
    %123 = arith.addf %108, %122 : vector<16x128xf32>
    %cst_51 = arith.constant dense<0.000000e+00> : vector<16xf32>
    %124 = vector.multi_reduction <add>, %123, %cst_51 [1] : vector<16x128xf32> to vector<16xf32>
    %125 = vector.shape_cast %124 : vector<16xf32> to vector<16x1xf32>
    %cst_52 = arith.constant 1.280000e+02 : f32
    %126 = vector.broadcast %cst_52 : f32 to vector<16x1xf32>
    %127 = arith.divf %125, %126 : vector<16x1xf32>
    %128 = vector.broadcast %127 : vector<16x1xf32> to vector<16x128xf32>
    %129 = arith.subf %123, %128 : vector<16x128xf32>
    %130 = arith.mulf %129, %129 : vector<16x128xf32>
    %cst_53 = arith.constant dense<0.000000e+00> : vector<16xf32>
    %131 = vector.multi_reduction <add>, %130, %cst_53 [1] : vector<16x128xf32> to vector<16xf32>
    %132 = vector.shape_cast %131 : vector<16xf32> to vector<16x1xf32>
    %cst_54 = arith.constant 1.280000e+02 : f32
    %133 = vector.broadcast %cst_54 : f32 to vector<16x1xf32>
    %134 = arith.divf %132, %133 : vector<16x1xf32>
    %cst_55 = arith.constant 9.99999974E-6 : f32
    %135 = vector.broadcast %cst_55 : f32 to vector<16x1xf32>
    %136 = arith.addf %134, %135 : vector<16x1xf32>
    %137 = math.rsqrt %136 : vector<16x1xf32>
    %138 = vector.broadcast %137 : vector<16x1xf32> to vector<16x128xf32>
    %139 = arith.mulf %129, %138 : vector<16x128xf32>
    %c0_56 = arith.constant 0 : index
    %c0_57 = arith.constant 0 : index
    %140 = vector.load %arg13[%c0_56, %c0_57] : memref<1x128xf32, #tpu.memory_space<vmem>>, vector<1x128xf32>
    %141 = vector.broadcast %140 : vector<1x128xf32> to vector<16x128xf32>
    %142 = arith.mulf %139, %141 : vector<16x128xf32>
    %c0_58 = arith.constant 0 : index
    %c0_59 = arith.constant 0 : index
    %143 = vector.load %arg14[%c0_58, %c0_59] : memref<1x128xf32, #tpu.memory_space<vmem>>, vector<1x128xf32>
    %144 = vector.broadcast %143 : vector<1x128xf32> to vector<16x128xf32>
    %145 = arith.addf %142, %144 : vector<16x128xf32>
    %c0_60 = arith.constant 0 : index
    %c0_61 = arith.constant 0 : index
    %c0_62 = arith.constant 0 : index
    %146 = vector.load %arg15[%c0_60, %c0_61, %c0_62] : memref<1x16x128xf32, #tpu.memory_space<vmem>>, vector<1x16x128xf32>
    %147 = vector.shape_cast %146 : vector<1x16x128xf32> to vector<16x128xf32>
    %148 = vector.shape_cast %145 : vector<16x128xf32> to vector<1x16x128xf32>
    tpu.vector_store %arg15[%c0_60, %c0_61, %c0_62], %148 {strides = array<i32>} : memref<1x16x128xf32, #tpu.memory_space<vmem>>, vector<1x16x128xf32>,
    return
  }
  func.func @transform_0(%arg0: i32) -> (i32, i32, i32) {
    %c0_i32 = arith.constant 0 : i32
    %c0_i32_0 = arith.constant 0 : i32
    %c0_i32_1 = arith.constant 0 : i32
    return %arg0, %c0_i32, %c0_i32_0 : i32, i32, i32
  }
  func.func @transform_1(%arg0: i32) -> (i32, i32, i32) {
    %c0_i32 = arith.constant 0 : i32
    %c0_i32_0 = arith.constant 0 : i32
    %c0_i32_1 = arith.constant 0 : i32
    %c0_i32_2 = arith.constant 0 : i32
    return %c0_i32, %c0_i32_0, %c0_i32_1 : i32, i32, i32
  }
  func.func @transform_2(%arg0: i32) -> (i32, i32) {
    %c0_i32 = arith.constant 0 : i32
    %c0_i32_0 = arith.constant 0 : i32
    %c0_i32_1 = arith.constant 0 : i32
    return %c0_i32, %c0_i32_0 : i32, i32
  }
  func.func @transform_3(%arg0: i32) -> (i32, i32) {
    %c0_i32 = arith.constant 0 : i32
    %c0_i32_0 = arith.constant 0 : i32
    %c0_i32_1 = arith.constant 0 : i32
    return %c0_i32, %c0_i32_0 : i32, i32
  }
  func.func @transform_4(%arg0: i32) -> (i32, i32) {
    %c0_i32 = arith.constant 0 : i32
    %c0_i32_0 = arith.constant 0 : i32
    %c0_i32_1 = arith.constant 0 : i32
    return %c0_i32, %c0_i32_0 : i32, i32
  }
  func.func @transform_5(%arg0: i32) -> (i32, i32) {
    %c0_i32 = arith.constant 0 : i32
    %c0_i32_0 = arith.constant 0 : i32
    %c0_i32_1 = arith.constant 0 : i32
    return %c0_i32, %c0_i32_0 : i32, i32
  }
  func.func @transform_6(%arg0: i32) -> (i32, i32) {
    %c0_i32 = arith.constant 0 : i32
    %c0_i32_0 = arith.constant 0 : i32
    %c0_i32_1 = arith.constant 0 : i32
    return %c0_i32, %c0_i32_0 : i32, i32
  }
  func.func @transform_7(%arg0: i32) -> (i32, i32) {
    %c0_i32 = arith.constant 0 : i32
    %c0_i32_0 = arith.constant 0 : i32
    %c0_i32_1 = arith.constant 0 : i32
    return %c0_i32, %c0_i32_0 : i32, i32
  }
  func.func @transform_8(%arg0: i32) -> (i32, i32) {
    %c0_i32 = arith.constant 0 : i32
    %c0_i32_0 = arith.constant 0 : i32
    %c0_i32_1 = arith.constant 0 : i32
    return %c0_i32, %c0_i32_0 : i32, i32
  }
  func.func @transform_9(%arg0: i32) -> (i32, i32) {
    %c0_i32 = arith.constant 0 : i32
    %c0_i32_0 = arith.constant 0 : i32
    %c0_i32_1 = arith.constant 0 : i32
    return %c0_i32, %c0_i32_0 : i32, i32
  }
  func.func @transform_10(%arg0: i32) -> (i32, i32) {
    %c0_i32 = arith.constant 0 : i32
    %c0_i32_0 = arith.constant 0 : i32
    %c0_i32_1 = arith.constant 0 : i32
    return %c0_i32, %c0_i32_0 : i32, i32
  }
  func.func @transform_11(%arg0: i32) -> (i32, i32) {
    %c0_i32 = arith.constant 0 : i32
    %c0_i32_0 = arith.constant 0 : i32
    %c0_i32_1 = arith.constant 0 : i32
    return %c0_i32, %c0_i32_0 : i32, i32
  }
  func.func @transform_12(%arg0: i32) -> (i32, i32) {
    %c0_i32 = arith.constant 0 : i32
    %c0_i32_0 = arith.constant 0 : i32
    %c0_i32_1 = arith.constant 0 : i32
    return %c0_i32, %c0_i32_0 : i32, i32
  }
  func.func @transform_13(%arg0: i32) -> (i32, i32) {
    %c0_i32 = arith.constant 0 : i32
    %c0_i32_0 = arith.constant 0 : i32
    %c0_i32_1 = arith.constant 0 : i32
    return %c0_i32, %c0_i32_0 : i32, i32
  }
  func.func @transform_14(%arg0: i32) -> (i32, i32, i32) {
    %c0_i32 = arith.constant 0 : i32
    %c0_i32_0 = arith.constant 0 : i32
    %c0_i32_1 = arith.constant 0 : i32
    return %arg0, %c0_i32, %c0_i32_0 : i32, i32, i32
  }
}

module attributes {stable_mosaic.version = 11 : i64} {
  func.func @_encoder_layer_kernel(%arg0: i32, %arg1: memref<1x16x128xf32, #tpu.memory_space<vmem>>, %arg2: memref<128x384xbf16, #tpu.memory_space<vmem>>, %arg3: memref<1x384xf32, #tpu.memory_space<vmem>>, %arg4: memref<128x128xbf16, #tpu.memory_space<vmem>>, %arg5: memref<1x128xf32, #tpu.memory_space<vmem>>, %arg6: memref<128x256xbf16, #tpu.memory_space<vmem>>, %arg7: memref<1x256xf32, #tpu.memory_space<vmem>>, %arg8: memref<256x128xbf16, #tpu.memory_space<vmem>>, %arg9: memref<1x128xf32, #tpu.memory_space<vmem>>, %arg10: memref<1x128xf32, #tpu.memory_space<vmem>>, %arg11: memref<1x128xf32, #tpu.memory_space<vmem>>, %arg12: memref<1x128xf32, #tpu.memory_space<vmem>>, %arg13: memref<1x128xf32, #tpu.memory_space<vmem>>, %arg14: memref<1x16x128xf32, #tpu.memory_space<vmem>>) attributes {dimension_semantics = [#tpu.dimension_semantics<parallel>], iteration_bounds = array<i64: 2>, scalar_prefetch = 0 : i64, scratch_operands = 0 : i64, tpu.core_type = #tpu.core_type<tc>, window_params = [{transform_indices = @transform_0, window_bounds = array<i64: 1, 16, 128>}, {pipeline_mode = #tpu.pipeline_mode<synchronous>, transform_indices = @transform_1, window_bounds = array<i64: 128, 384>}, {pipeline_mode = #tpu.pipeline_mode<synchronous>, transform_indices = @transform_2, window_bounds = array<i64: 1, 384>}, {pipeline_mode = #tpu.pipeline_mode<synchronous>, transform_indices = @transform_3, window_bounds = array<i64: 128, 128>}, {pipeline_mode = #tpu.pipeline_mode<synchronous>, transform_indices = @transform_4, window_bounds = array<i64: 1, 128>}, {pipeline_mode = #tpu.pipeline_mode<synchronous>, transform_indices = @transform_5, window_bounds = array<i64: 128, 256>}, {pipeline_mode = #tpu.pipeline_mode<synchronous>, transform_indices = @transform_6, window_bounds = array<i64: 1, 256>}, {pipeline_mode = #tpu.pipeline_mode<synchronous>, transform_indices = @transform_7, window_bounds = array<i64: 256, 128>}, {pipeline_mode = #tpu.pipeline_mode<synchronous>, transform_indices = @transform_8, window_bounds = array<i64: 1, 128>}, {pipeline_mode = #tpu.pipeline_mode<synchronous>, transform_indices = @transform_9, window_bounds = array<i64: 1, 128>}, {pipeline_mode = #tpu.pipeline_mode<synchronous>, transform_indices = @transform_10, window_bounds = array<i64: 1, 128>}, {pipeline_mode = #tpu.pipeline_mode<synchronous>, transform_indices = @transform_11, window_bounds = array<i64: 1, 128>}, {pipeline_mode = #tpu.pipeline_mode<synchronous>, transform_indices = @transform_12, window_bounds = array<i64: 1, 128>}, {transform_indices = @transform_13, window_bounds = array<i64: 1, 16, 128>}]} {
    %c0 = arith.constant 0 : index
    %c0_0 = arith.constant 0 : index
    %c0_1 = arith.constant 0 : index
    %0 = vector.load %arg1[%c0, %c0_0, %c0_1] : memref<1x16x128xf32, #tpu.memory_space<vmem>>, vector<1x16x128xf32>
    %1 = vector.shape_cast %0 : vector<1x16x128xf32> to vector<16x128xf32>
    %2 = arith.truncf %1 : vector<16x128xf32> to vector<16x128xbf16>
    %c0_2 = arith.constant 0 : index
    %c0_3 = arith.constant 0 : index
    %3 = vector.load %arg2[%c0_2, %c0_3] : memref<128x384xbf16, #tpu.memory_space<vmem>>, vector<128x384xbf16>
    %cst = arith.constant dense<0.000000e+00> : vector<16x384xf32>
    %4 = tpu.matmul %2, %3, %cst {dimension_numbers = #tpu.dot_dimension_numbers<[1], [0], [0], [1], [0, 0, 1, 1], [], []>} : vector<16x128xbf16>, vector<128x384xbf16>, vector<16x384xf32> -> vector<16x384xf32>
    %c0_4 = arith.constant 0 : index
    %c0_5 = arith.constant 0 : index
    %5 = vector.load %arg3[%c0_4, %c0_5] : memref<1x384xf32, #tpu.memory_space<vmem>>, vector<1x384xf32>
    %6 = vector.broadcast %5 : vector<1x384xf32> to vector<16x384xf32>
    %7 = arith.addf %4, %6 : vector<16x384xf32>
    %8 = vector.extract_strided_slice %7 {offsets = [0, 0], sizes = [16, 128], strides = [1, 1]} : vector<16x384xf32> to vector<16x128xf32>
    %cst_6 = arith.constant 0.176776692 : f32
    %9 = vector.broadcast %cst_6 : f32 to vector<16x128xf32>
    %10 = arith.mulf %8, %9 : vector<16x128xf32>
    %11 = arith.truncf %10 : vector<16x128xf32> to vector<16x128xbf16>
    %12 = vector.extract_strided_slice %7 {offsets = [0, 128], sizes = [16, 128], strides = [1, 1]} : vector<16x384xf32> to vector<16x128xf32>
    %13 = arith.truncf %12 : vector<16x128xf32> to vector<16x128xbf16>
    %14 = vector.extract_strided_slice %7 {offsets = [0, 256], sizes = [16, 128], strides = [1, 1]} : vector<16x384xf32> to vector<16x128xf32>
    %15 = arith.truncf %14 : vector<16x128xf32> to vector<16x128xbf16>
    %16 = vector.extract_strided_slice %11 {offsets = [0, 0], sizes = [16, 32], strides = [1, 1]} : vector<16x128xbf16> to vector<16x32xbf16>
    %17 = vector.extract_strided_slice %13 {offsets = [0, 0], sizes = [16, 32], strides = [1, 1]} : vector<16x128xbf16> to vector<16x32xbf16>
    %18 = vector.extract_strided_slice %15 {offsets = [0, 0], sizes = [16, 32], strides = [1, 1]} : vector<16x128xbf16> to vector<16x32xbf16>
    %cst_7 = arith.constant dense<0.000000e+00> : vector<16x16xf32>
    %19 = tpu.matmul %16, %17, %cst_7 {dimension_numbers = #tpu.dot_dimension_numbers<[1], [1], [0], [0], [0, 0, 1, 0], [], []>} : vector<16x32xbf16>, vector<16x32xbf16>, vector<16x16xf32> -> vector<16x16xf32>
    %cst_8 = arith.constant dense<0xFF800000> : vector<16xf32>
    %20 = vector.multi_reduction <maximumf>, %19, %cst_8 [1] : vector<16x16xf32> to vector<16xf32>
    %21 = vector.shape_cast %20 : vector<16xf32> to vector<16x1xf32>
    %22 = vector.broadcast %21 : vector<16x1xf32> to vector<16x16xf32>
    %23 = arith.subf %19, %22 : vector<16x16xf32>
    %24 = math.exp %23 : vector<16x16xf32>
    %cst_9 = arith.constant dense<0.000000e+00> : vector<16xf32>
    %25 = vector.multi_reduction <add>, %24, %cst_9 [1] : vector<16x16xf32> to vector<16xf32>
    %26 = vector.shape_cast %25 : vector<16xf32> to vector<16x1xf32>
    %27 = vector.broadcast %26 : vector<16x1xf32> to vector<16x16xf32>
    %28 = arith.divf %24, %27 : vector<16x16xf32>
    %29 = arith.truncf %28 : vector<16x16xf32> to vector<16x16xbf16>
    %cst_10 = arith.constant dense<0.000000e+00> : vector<16x32xf32>
    %30 = tpu.matmul %29, %18, %cst_10 {dimension_numbers = #tpu.dot_dimension_numbers<[1], [0], [0], [1], [0, 0, 1, 1], [], []>} : vector<16x16xbf16>, vector<16x32xbf16>, vector<16x32xf32> -> vector<16x32xf32>
    %31 = vector.extract_strided_slice %11 {offsets = [0, 32], sizes = [16, 32], strides = [1, 1]} : vector<16x128xbf16> to vector<16x32xbf16>
    %32 = vector.extract_strided_slice %13 {offsets = [0, 32], sizes = [16, 32], strides = [1, 1]} : vector<16x128xbf16> to vector<16x32xbf16>
    %33 = vector.extract_strided_slice %15 {offsets = [0, 32], sizes = [16, 32], strides = [1, 1]} : vector<16x128xbf16> to vector<16x32xbf16>
    %cst_11 = arith.constant dense<0.000000e+00> : vector<16x16xf32>
    %34 = tpu.matmul %31, %32, %cst_11 {dimension_numbers = #tpu.dot_dimension_numbers<[1], [1], [0], [0], [0, 0, 1, 0], [], []>} : vector<16x32xbf16>, vector<16x32xbf16>, vector<16x16xf32> -> vector<16x16xf32>
    %cst_12 = arith.constant dense<0xFF800000> : vector<16xf32>
    %35 = vector.multi_reduction <maximumf>, %34, %cst_12 [1] : vector<16x16xf32> to vector<16xf32>
    %36 = vector.shape_cast %35 : vector<16xf32> to vector<16x1xf32>
    %37 = vector.broadcast %36 : vector<16x1xf32> to vector<16x16xf32>
    %38 = arith.subf %34, %37 : vector<16x16xf32>
    %39 = math.exp %38 : vector<16x16xf32>
    %cst_13 = arith.constant dense<0.000000e+00> : vector<16xf32>
    %40 = vector.multi_reduction <add>, %39, %cst_13 [1] : vector<16x16xf32> to vector<16xf32>
    %41 = vector.shape_cast %40 : vector<16xf32> to vector<16x1xf32>
    %42 = vector.broadcast %41 : vector<16x1xf32> to vector<16x16xf32>
    %43 = arith.divf %39, %42 : vector<16x16xf32>
    %44 = arith.truncf %43 : vector<16x16xf32> to vector<16x16xbf16>
    %cst_14 = arith.constant dense<0.000000e+00> : vector<16x32xf32>
    %45 = tpu.matmul %44, %33, %cst_14 {dimension_numbers = #tpu.dot_dimension_numbers<[1], [0], [0], [1], [0, 0, 1, 1], [], []>} : vector<16x16xbf16>, vector<16x32xbf16>, vector<16x32xf32> -> vector<16x32xf32>
    %46 = vector.extract_strided_slice %11 {offsets = [0, 64], sizes = [16, 32], strides = [1, 1]} : vector<16x128xbf16> to vector<16x32xbf16>
    %47 = vector.extract_strided_slice %13 {offsets = [0, 64], sizes = [16, 32], strides = [1, 1]} : vector<16x128xbf16> to vector<16x32xbf16>
    %48 = vector.extract_strided_slice %15 {offsets = [0, 64], sizes = [16, 32], strides = [1, 1]} : vector<16x128xbf16> to vector<16x32xbf16>
    %cst_15 = arith.constant dense<0.000000e+00> : vector<16x16xf32>
    %49 = tpu.matmul %46, %47, %cst_15 {dimension_numbers = #tpu.dot_dimension_numbers<[1], [1], [0], [0], [0, 0, 1, 0], [], []>} : vector<16x32xbf16>, vector<16x32xbf16>, vector<16x16xf32> -> vector<16x16xf32>
    %cst_16 = arith.constant dense<0xFF800000> : vector<16xf32>
    %50 = vector.multi_reduction <maximumf>, %49, %cst_16 [1] : vector<16x16xf32> to vector<16xf32>
    %51 = vector.shape_cast %50 : vector<16xf32> to vector<16x1xf32>
    %52 = vector.broadcast %51 : vector<16x1xf32> to vector<16x16xf32>
    %53 = arith.subf %49, %52 : vector<16x16xf32>
    %54 = math.exp %53 : vector<16x16xf32>
    %cst_17 = arith.constant dense<0.000000e+00> : vector<16xf32>
    %55 = vector.multi_reduction <add>, %54, %cst_17 [1] : vector<16x16xf32> to vector<16xf32>
    %56 = vector.shape_cast %55 : vector<16xf32> to vector<16x1xf32>
    %57 = vector.broadcast %56 : vector<16x1xf32> to vector<16x16xf32>
    %58 = arith.divf %54, %57 : vector<16x16xf32>
    %59 = arith.truncf %58 : vector<16x16xf32> to vector<16x16xbf16>
    %cst_18 = arith.constant dense<0.000000e+00> : vector<16x32xf32>
    %60 = tpu.matmul %59, %48, %cst_18 {dimension_numbers = #tpu.dot_dimension_numbers<[1], [0], [0], [1], [0, 0, 1, 1], [], []>} : vector<16x16xbf16>, vector<16x32xbf16>, vector<16x32xf32> -> vector<16x32xf32>
    %61 = vector.extract_strided_slice %11 {offsets = [0, 96], sizes = [16, 32], strides = [1, 1]} : vector<16x128xbf16> to vector<16x32xbf16>
    %62 = vector.extract_strided_slice %13 {offsets = [0, 96], sizes = [16, 32], strides = [1, 1]} : vector<16x128xbf16> to vector<16x32xbf16>
    %63 = vector.extract_strided_slice %15 {offsets = [0, 96], sizes = [16, 32], strides = [1, 1]} : vector<16x128xbf16> to vector<16x32xbf16>
    %cst_19 = arith.constant dense<0.000000e+00> : vector<16x16xf32>
    %64 = tpu.matmul %61, %62, %cst_19 {dimension_numbers = #tpu.dot_dimension_numbers<[1], [1], [0], [0], [0, 0, 1, 0], [], []>} : vector<16x32xbf16>, vector<16x32xbf16>, vector<16x16xf32> -> vector<16x16xf32>
    %cst_20 = arith.constant dense<0xFF800000> : vector<16xf32>
    %65 = vector.multi_reduction <maximumf>, %64, %cst_20 [1] : vector<16x16xf32> to vector<16xf32>
    %66 = vector.shape_cast %65 : vector<16xf32> to vector<16x1xf32>
    %67 = vector.broadcast %66 : vector<16x1xf32> to vector<16x16xf32>
    %68 = arith.subf %64, %67 : vector<16x16xf32>
    %69 = math.exp %68 : vector<16x16xf32>
    %cst_21 = arith.constant dense<0.000000e+00> : vector<16xf32>
    %70 = vector.multi_reduction <add>, %69, %cst_21 [1] : vector<16x16xf32> to vector<16xf32>
    %71 = vector.shape_cast %70 : vector<16xf32> to vector<16x1xf32>
    %72 = vector.broadcast %71 : vector<16x1xf32> to vector<16x16xf32>
    %73 = arith.divf %69, %72 : vector<16x16xf32>
    %74 = arith.truncf %73 : vector<16x16xf32> to vector<16x16xbf16>
    %cst_22 = arith.constant dense<0.000000e+00> : vector<16x32xf32>
    %75 = tpu.matmul %74, %63, %cst_22 {dimension_numbers = #tpu.dot_dimension_numbers<[1], [0], [0], [1], [0, 0, 1, 1], [], []>} : vector<16x16xbf16>, vector<16x32xbf16>, vector<16x32xf32> -> vector<16x32xf32>
    %76 = tpu.concatenate %30, %45, %60, %75 in 1 : vector<16x32xf32>, vector<16x32xf32>, vector<16x32xf32>, vector<16x32xf32> -> vector<16x128xf32>
    %77 = arith.truncf %76 : vector<16x128xf32> to vector<16x128xbf16>
    %c0_23 = arith.constant 0 : index
    %c0_24 = arith.constant 0 : index
    %78 = vector.load %arg4[%c0_23, %c0_24] : memref<128x128xbf16, #tpu.memory_space<vmem>>, vector<128x128xbf16>
    %cst_25 = arith.constant dense<0.000000e+00> : vector<16x128xf32>
    %79 = tpu.matmul %77, %78, %cst_25 {dimension_numbers = #tpu.dot_dimension_numbers<[1], [0], [0], [1], [0, 0, 1, 1], [], []>} : vector<16x128xbf16>, vector<128x128xbf16>, vector<16x128xf32> -> vector<16x128xf32>
    %c0_26 = arith.constant 0 : index
    %c0_27 = arith.constant 0 : index
    %80 = vector.load %arg5[%c0_26, %c0_27] : memref<1x128xf32, #tpu.memory_space<vmem>>, vector<1x128xf32>
    %81 = vector.broadcast %80 : vector<1x128xf32> to vector<16x128xf32>
    %82 = arith.addf %79, %81 : vector<16x128xf32>
    %83 = arith.addf %1, %82 : vector<16x128xf32>
    %cst_28 = arith.constant dense<0.000000e+00> : vector<16xf32>
    %84 = vector.multi_reduction <add>, %83, %cst_28 [1] : vector<16x128xf32> to vector<16xf32>
    %85 = vector.shape_cast %84 : vector<16xf32> to vector<16x1xf32>
    %cst_29 = arith.constant 1.280000e+02 : f32
    %86 = vector.broadcast %cst_29 : f32 to vector<16x1xf32>
    %87 = arith.divf %85, %86 : vector<16x1xf32>
    %88 = vector.broadcast %87 : vector<16x1xf32> to vector<16x128xf32>
    %89 = arith.subf %83, %88 : vector<16x128xf32>
    %90 = arith.mulf %89, %89 : vector<16x128xf32>
    %cst_30 = arith.constant dense<0.000000e+00> : vector<16xf32>
    %91 = vector.multi_reduction <add>, %90, %cst_30 [1] : vector<16x128xf32> to vector<16xf32>
    %92 = vector.shape_cast %91 : vector<16xf32> to vector<16x1xf32>
    %cst_31 = arith.constant 1.280000e+02 : f32
    %93 = vector.broadcast %cst_31 : f32 to vector<16x1xf32>
    %94 = arith.divf %92, %93 : vector<16x1xf32>
    %cst_32 = arith.constant 9.99999974E-6 : f32
    %95 = vector.broadcast %cst_32 : f32 to vector<16x1xf32>
    %96 = arith.addf %94, %95 : vector<16x1xf32>
    %97 = math.rsqrt %96 : vector<16x1xf32>
    %98 = vector.broadcast %97 : vector<16x1xf32> to vector<16x128xf32>
    %99 = arith.mulf %89, %98 : vector<16x128xf32>
    %c0_33 = arith.constant 0 : index
    %c0_34 = arith.constant 0 : index
    %100 = vector.load %arg10[%c0_33, %c0_34] : memref<1x128xf32, #tpu.memory_space<vmem>>, vector<1x128xf32>
    %101 = vector.broadcast %100 : vector<1x128xf32> to vector<16x128xf32>
    %102 = arith.mulf %99, %101 : vector<16x128xf32>
    %c0_35 = arith.constant 0 : index
    %c0_36 = arith.constant 0 : index
    %103 = vector.load %arg11[%c0_35, %c0_36] : memref<1x128xf32, #tpu.memory_space<vmem>>, vector<1x128xf32>
    %104 = vector.broadcast %103 : vector<1x128xf32> to vector<16x128xf32>
    %105 = arith.addf %102, %104 : vector<16x128xf32>
    %106 = arith.truncf %105 : vector<16x128xf32> to vector<16x128xbf16>
    %c0_37 = arith.constant 0 : index
    %c0_38 = arith.constant 0 : index
    %107 = vector.load %arg6[%c0_37, %c0_38] : memref<128x256xbf16, #tpu.memory_space<vmem>>, vector<128x256xbf16>
    %cst_39 = arith.constant dense<0.000000e+00> : vector<16x256xf32>
    %108 = tpu.matmul %106, %107, %cst_39 {dimension_numbers = #tpu.dot_dimension_numbers<[1], [0], [0], [1], [0, 0, 1, 1], [], []>} : vector<16x128xbf16>, vector<128x256xbf16>, vector<16x256xf32> -> vector<16x256xf32>
    %c0_40 = arith.constant 0 : index
    %c0_41 = arith.constant 0 : index
    %109 = vector.load %arg7[%c0_40, %c0_41] : memref<1x256xf32, #tpu.memory_space<vmem>>, vector<1x256xf32>
    %110 = vector.broadcast %109 : vector<1x256xf32> to vector<16x256xf32>
    %111 = arith.addf %108, %110 : vector<16x256xf32>
    %cst_42 = arith.constant 0.000000e+00 : f32
    %112 = vector.broadcast %cst_42 : f32 to vector<16x256xf32>
    %113 = arith.maximumf %111, %112 : vector<16x256xf32>
    %114 = arith.truncf %113 : vector<16x256xf32> to vector<16x256xbf16>
    %c0_43 = arith.constant 0 : index
    %c0_44 = arith.constant 0 : index
    %115 = vector.load %arg8[%c0_43, %c0_44] : memref<256x128xbf16, #tpu.memory_space<vmem>>, vector<256x128xbf16>
    %cst_45 = arith.constant dense<0.000000e+00> : vector<16x128xf32>
    %116 = tpu.matmul %114, %115, %cst_45 {dimension_numbers = #tpu.dot_dimension_numbers<[1], [0], [0], [1], [0, 0, 1, 1], [], []>} : vector<16x256xbf16>, vector<256x128xbf16>, vector<16x128xf32> -> vector<16x128xf32>
    %c0_46 = arith.constant 0 : index
    %c0_47 = arith.constant 0 : index
    %117 = vector.load %arg9[%c0_46, %c0_47] : memref<1x128xf32, #tpu.memory_space<vmem>>, vector<1x128xf32>
    %118 = vector.broadcast %117 : vector<1x128xf32> to vector<16x128xf32>
    %119 = arith.addf %116, %118 : vector<16x128xf32>
    %120 = arith.addf %105, %119 : vector<16x128xf32>
    %cst_48 = arith.constant dense<0.000000e+00> : vector<16xf32>
    %121 = vector.multi_reduction <add>, %120, %cst_48 [1] : vector<16x128xf32> to vector<16xf32>
    %122 = vector.shape_cast %121 : vector<16xf32> to vector<16x1xf32>
    %cst_49 = arith.constant 1.280000e+02 : f32
    %123 = vector.broadcast %cst_49 : f32 to vector<16x1xf32>
    %124 = arith.divf %122, %123 : vector<16x1xf32>
    %125 = vector.broadcast %124 : vector<16x1xf32> to vector<16x128xf32>
    %126 = arith.subf %120, %125 : vector<16x128xf32>
    %127 = arith.mulf %126, %126 : vector<16x128xf32>
    %cst_50 = arith.constant dense<0.000000e+00> : vector<16xf32>
    %128 = vector.multi_reduction <add>, %127, %cst_50 [1] : vector<16x128xf32> to vector<16xf32>
    %129 = vector.shape_cast %128 : vector<16xf32> to vector<16x1xf32>
    %cst_51 = arith.constant 1.280000e+02 : f32
    %130 = vector.broadcast %cst_51 : f32 to vector<16x1xf32>
    %131 = arith.divf %129, %130 : vector<16x1xf32>
    %cst_52 = arith.constant 9.99999974E-6 : f32
    %132 = vector.broadcast %cst_52 : f32 to vector<16x1xf32>
    %133 = arith.addf %131, %132 : vector<16x1xf32>
    %134 = math.rsqrt %133 : vector<16x1xf32>
    %135 = vector.broadcast %134 : vector<16x1xf32> to vector<16x128xf32>
    %136 = arith.mulf %126, %135 : vector<16x128xf32>
    %c0_53 = arith.constant 0 : index
    %c0_54 = arith.constant 0 : index
    %137 = vector.load %arg12[%c0_53, %c0_54] : memref<1x128xf32, #tpu.memory_space<vmem>>, vector<1x128xf32>
    %138 = vector.broadcast %137 : vector<1x128xf32> to vector<16x128xf32>
    %139 = arith.mulf %136, %138 : vector<16x128xf32>
    %c0_55 = arith.constant 0 : index
    %c0_56 = arith.constant 0 : index
    %140 = vector.load %arg13[%c0_55, %c0_56] : memref<1x128xf32, #tpu.memory_space<vmem>>, vector<1x128xf32>
    %141 = vector.broadcast %140 : vector<1x128xf32> to vector<16x128xf32>
    %142 = arith.addf %139, %141 : vector<16x128xf32>
    %c0_57 = arith.constant 0 : index
    %c0_58 = arith.constant 0 : index
    %c0_59 = arith.constant 0 : index
    %143 = vector.load %arg14[%c0_57, %c0_58, %c0_59] : memref<1x16x128xf32, #tpu.memory_space<vmem>>, vector<1x16x128xf32>
    %144 = vector.shape_cast %143 : vector<1x16x128xf32> to vector<16x128xf32>
    %145 = vector.shape_cast %142 : vector<16x128xf32> to vector<1x16x128xf32>
    tpu.vector_store %arg14[%c0_57, %c0_58, %c0_59], %145 {strides = array<i32>} : memref<1x16x128xf32, #tpu.memory_space<vmem>>, vector<1x16x128xf32>,
    return
  }
  func.func @transform_0(%arg0: i32) -> (i32, i32, i32) {
    %c0_i32 = arith.constant 0 : i32
    %c0_i32_0 = arith.constant 0 : i32
    %c0_i32_1 = arith.constant 0 : i32
    return %arg0, %c0_i32, %c0_i32_0 : i32, i32, i32
  }
  func.func @transform_1(%arg0: i32) -> (i32, i32) {
    %c0_i32 = arith.constant 0 : i32
    %c0_i32_0 = arith.constant 0 : i32
    %c0_i32_1 = arith.constant 0 : i32
    return %c0_i32, %c0_i32_0 : i32, i32
  }
  func.func @transform_2(%arg0: i32) -> (i32, i32) {
    %c0_i32 = arith.constant 0 : i32
    %c0_i32_0 = arith.constant 0 : i32
    %c0_i32_1 = arith.constant 0 : i32
    return %c0_i32, %c0_i32_0 : i32, i32
  }
  func.func @transform_3(%arg0: i32) -> (i32, i32) {
    %c0_i32 = arith.constant 0 : i32
    %c0_i32_0 = arith.constant 0 : i32
    %c0_i32_1 = arith.constant 0 : i32
    return %c0_i32, %c0_i32_0 : i32, i32
  }
  func.func @transform_4(%arg0: i32) -> (i32, i32) {
    %c0_i32 = arith.constant 0 : i32
    %c0_i32_0 = arith.constant 0 : i32
    %c0_i32_1 = arith.constant 0 : i32
    return %c0_i32, %c0_i32_0 : i32, i32
  }
  func.func @transform_5(%arg0: i32) -> (i32, i32) {
    %c0_i32 = arith.constant 0 : i32
    %c0_i32_0 = arith.constant 0 : i32
    %c0_i32_1 = arith.constant 0 : i32
    return %c0_i32, %c0_i32_0 : i32, i32
  }
  func.func @transform_6(%arg0: i32) -> (i32, i32) {
    %c0_i32 = arith.constant 0 : i32
    %c0_i32_0 = arith.constant 0 : i32
    %c0_i32_1 = arith.constant 0 : i32
    return %c0_i32, %c0_i32_0 : i32, i32
  }
  func.func @transform_7(%arg0: i32) -> (i32, i32) {
    %c0_i32 = arith.constant 0 : i32
    %c0_i32_0 = arith.constant 0 : i32
    %c0_i32_1 = arith.constant 0 : i32
    return %c0_i32, %c0_i32_0 : i32, i32
  }
  func.func @transform_8(%arg0: i32) -> (i32, i32) {
    %c0_i32 = arith.constant 0 : i32
    %c0_i32_0 = arith.constant 0 : i32
    %c0_i32_1 = arith.constant 0 : i32
    return %c0_i32, %c0_i32_0 : i32, i32
  }
  func.func @transform_9(%arg0: i32) -> (i32, i32) {
    %c0_i32 = arith.constant 0 : i32
    %c0_i32_0 = arith.constant 0 : i32
    %c0_i32_1 = arith.constant 0 : i32
    return %c0_i32, %c0_i32_0 : i32, i32
  }
  func.func @transform_10(%arg0: i32) -> (i32, i32) {
    %c0_i32 = arith.constant 0 : i32
    %c0_i32_0 = arith.constant 0 : i32
    %c0_i32_1 = arith.constant 0 : i32
    return %c0_i32, %c0_i32_0 : i32, i32
  }
  func.func @transform_11(%arg0: i32) -> (i32, i32) {
    %c0_i32 = arith.constant 0 : i32
    %c0_i32_0 = arith.constant 0 : i32
    %c0_i32_1 = arith.constant 0 : i32
    return %c0_i32, %c0_i32_0 : i32, i32
  }
  func.func @transform_12(%arg0: i32) -> (i32, i32) {
    %c0_i32 = arith.constant 0 : i32
    %c0_i32_0 = arith.constant 0 : i32
    %c0_i32_1 = arith.constant 0 : i32
    return %c0_i32, %c0_i32_0 : i32, i32
  }
  func.func @transform_13(%arg0: i32) -> (i32, i32, i32) {
    %c0_i32 = arith.constant 0 : i32
    %c0_i32_0 = arith.constant 0 : i32
    %c0_i32_1 = arith.constant 0 : i32
    return %arg0, %c0_i32, %c0_i32_0 : i32, i32, i32
  }
}

</mosaic_0001>

<bundles_post_ra>
// kernel: forward.5
= control target key start
LH: loop header
LB: loop body
LE: loop exit
PB: predicated region body
PF: predicated region fallthrough
CT: control target
= control target key end

     0   :  { %s702_s12 = smov 0   ;;  %s704_s13 = smov 0   ;;  %s823_s0 = inlined_call_operand.vmem [shape: f32[2,16,128], index: 0, kind: input, shape index: {}]   ;;  %s824_s1 = inlined_call_operand.vmem [shape: bf16[128,256], index: 1, kind: input, shape index: {}]   ;;  %s825_s2 = inlined_call_operand.vmem [shape: f32[1,256], index: 2, kind: input, shape index: {}]   ;;  %s826_s3 = inlined_call_operand.vmem [shape: f32[16,512], index: 3, kind: output, shape index: {}]  }
   0x1   :  { %s706_s14 = smov 0   ;;  %s708_s15 = smov 0  }
   0x2   :  { %s710_s16 = smov 0  }
   0x3 LB: > { %s543_s17 = sadd.s32 4294967295, %s679_s16   ;;  %s28_s18 = sadd.s32 1, %s675_s15  ;;  %s679_s16 = sphi %s710_s16, %s13_s16   ;;  %s675_s15 = sphi %s708_s15, %s831_s15   ;;  %s671_s14 = sphi %s706_s14, %s830_s14   ;;  %s667_s13 = sphi %s704_s13, %s829_s13   ;;  %s663_s12 = sphi %s702_s12, %s828_s12  }
   0x4   : > { %p30_p0 = scmp.ge.s32.totalorder %s28_s18, 2  ;;  %s123_s19 = sadd.s32 1, %s667_s13 }
   0x5   : > { %p133_p1 = scmp.ne.s32.totalorder %s667_s13, %s663_s12  ;;  %p134_p2 = scmp.eq.s32.totalorder %s543_s17, 1 }
   0x6   : > { %s833_s18 = smov (%p30_p0, %s28_s18), 0  ;;  %p549_p4 = scmp.ge.s32.totalorder %s679_s16, 1 }
   0x7   : > { %p734_p3 = por %p134_p2, %p133_p1  ;;  %s119_s21 = ssub.s32 %s675_s15, %s833_s18 }
   0x8   : > { %p188_p5 = scmp.lt.s32.totalorder %s679_s16, 3  ;;  %p121_p6 = scmp.eq.s32.totalorder %s119_s21, 0 }
   0xa   : > { %p189_p7 = pnand %p549_p4, %p188_p5 }
   0xb   : > { %s743_s22 = scalar_select %p121_p6, %s667_s13, %s123_s19  }
   0xc   : > { %192 = sbr.rel (%p189_p7) target bundleno = 260 (0x104), region = 32  ;;  %p225_p8 = scmp.lt.s32.totalorder (!%p189_p7), %s671_s14, 1 }
   0xd   : > { %s221_s21 = sand.u32 (!%p189_p7), 1, %s663_s12  }
   0xe   : > { %s550_s25 = sshll.u32 (!%p189_p7), %s221_s21, 5 }
  0x11   : > { %v617_v0 = vld [vmem:[%s824_s1 + $0x74] ss:$8 sps:$4 sm:$0xff]   ;;  %v619_v1 = vld [vmem:[%s824_s1 + $0x70] ss:$8 sps:$4 sm:$0xff]   ;;  %v681_v2 = vmov 0   ;;  %s226_s26 = scalar_select %p225_p8, %s671_s14, 1  ;;  %v270_v20 = vlaneseq }
  0x12   : > { %392 = vmatprep.mubr.bf16.mxu0 %v681_v2  ;;  %360 = vmatprep.subr.bf16.mxu0 %v617_v0  ;;  %v620_v3 = vld [vmem:[%s824_s1 + $0x64] ss:$8 sps:$4 sm:$0xff]   ;;  %v622_v4 = vld [vmem:[%s824_s1 + $0x60] ss:$8 sps:$4 sm:$0xff]   ;;  %v623_v5 = vld [vmem:[%s824_s1 + $0x54] ss:$8 sps:$4 sm:$0xff]  }
  0x13   : > { %361 = vmatpush1.bf16.msra.mxu0 %v619_v1  ;;  %v625_v6 = vld [vmem:[%s824_s1 + $0x50] ss:$8 sps:$4 sm:$0xff]   ;;  %v626_v7 = vld [vmem:[%s824_s1 + $0x44] ss:$8 sps:$4 sm:$0xff]   ;;  %v628_v8 = vld [vmem:[%s824_s1 + $0x40] ss:$8 sps:$4 sm:$0xff]  }
  0x14   : > { %362 = vmatprep.subr.bf16.mxu0 %v620_v3  ;;  %v629_v9 = vld [vmem:[%s824_s1 + $0x34] ss:$8 sps:$4 sm:$0xff]   ;;  %v631_v10 = vld [vmem:[%s824_s1 + $0x30] ss:$8 sps:$4 sm:$0xff]   ;;  %v632_v11 = vld [vmem:[%s824_s1 + $0x24] ss:$8 sps:$4 sm:$0xff]  }
  0x15   : > { %v634_v12 = vld [vmem:[%s824_s1 + $0x20] ss:$8 sps:$4 sm:$0xff]   ;;  %v635_v13 = vld [vmem:[%s824_s1 + $0x14] ss:$8 sps:$4 sm:$0xff]   ;;  %s574_s4 = sshll.u32 %s226_s26, 4  ;;  %v271_v21 = vshrl.u32 %v270_v20, 7 }
  0x16   : > { %v637_v14 = vld [vmem:[%s824_s1 + $0x10] ss:$8 sps:$4 sm:$0xff]   ;;  %v638_v15 = vld [vmem:[%s824_s1 + $0x4] ss:$8 sps:$4 sm:$0xff]   ;;  %s232_s11 = scalar_lea.vmem %s823_s0, %s574_s4  ;;  %v640_v16 = vld [vmem:[%s824_s1] ss:$8 sps:$4 sm:$0xff]  }
  0x17   : > { %363 = vmatpush1.bf16.msra.mxu0 %v622_v4  ;;  %v249_v17 = vld [vmem:[%s232_s11] sm:$0xff]  ;;  %v250_v18 = vld [vmem:[%s232_s11 + $0x8] sm:$0xff]  ;;  %v272_v22 = vsub.s32 0, %v271_v21  ;;  %v276_v24 = vsub.s32 1, %v271_v21  ;;  %s223_s26 = scalar_lea.vmem [#allocation2], %s550_s25  ;;  %s575_s12 = sshll.u32 (%p734_p3), %s671_s14, 4 }
  0x18   : > { %364 = vmatprep.subr.bf16.mxu0 %v623_v5  ;;  %v251_v19 = vpack.c.bf16 %v250_v18, %v249_v17  ;;  %v268_v23 = vld [vmem:[%s825_s2] sm:$0x3]  ;;  %s420_s29 = scalar_lea.vmem (%p734_p3), %s826_s3, %s575_s12 }
  0x19   : > { %v273_v25 = vrot.slane %v268_v23, %v272_v22  ;;  %v277_v26 = vrot.slane %v268_v23, %v276_v24 }
  0x1b   : > { %365 = vmatpush1.bf16.msra.mxu0 %v625_v6 }
  0x1c   : > { %366 = vmatprep.subr.bf16.mxu0 %v626_v7 }
  0x1f   : > { %367 = vmatpush1.bf16.msra.mxu0 %v628_v8 }
  0x20   : > { %368 = vmatprep.subr.bf16.mxu0 %v629_v9 }
  0x23   : > { %369 = vmatpush1.bf16.msra.mxu0 %v631_v10 }
  0x24   : > { %370 = vmatprep.subr.bf16.mxu0 %v632_v11 }
  0x27   : > { %371 = vmatpush1.bf16.msra.mxu0 %v634_v12 }
  0x28   : > { %372 = vmatprep.subr.bf16.mxu0 %v635_v13 }
  0x2b   : > { %373 = vmatpush1.bf16.msra.mxu0 %v637_v14 }
  0x2c   : > { %374 = vmatprep.subr.bf16.mxu0 %v638_v15 }
  0x2f   : > { %375 = vmatpush1.bf16.msra.mxu0 %v640_v16 }
  0x32   : > { %393 = vmatmul.mubr.bf16.vlgmr.msra.gmra.mxu0 %v251_v19 }
  0xf2   : > { %v394_v27 = vpop.f32.mrf.mxu0 }
  0xf3   : > { %v395_v28 = vadd.f32 %v394_v27, %v273_v25 }
  0xf4   : > { %v396_v29 = vpop.f32.mrf.mxu0 }
  0xf5   : > { %403 = vst [vmem:[%s223_s26] sm:$0xff] %v395_v28  ;;  %v397_v30 = vadd.f32 %v396_v29, %v277_v26 }
  0xf6   : > { %v398_v31 = vpop.f32.mrf.mxu0 }
  0xf7   : > { %404 = vst [vmem:[%s223_s26 + $0x8] sm:$0xff] %v397_v30  ;;  %v399_v32 = vadd.f32 %v398_v31, %v273_v25  ;;  %413 = sbr.rel (!%p734_p3) target bundleno = 260 (0x104), region = 36 }
  0xf8   : > { %v400_v33 = vpop.f32.mrf.mxu0 }
  0xf9   : > { %405 = vst [vmem:[%s223_s26 + $0x10] sm:$0xff] %v399_v32  ;;  %v401_v34 = vadd.f32 %v400_v33, %v277_v26 }
  0xfb   : > { %406 = vst [vmem:[%s223_s26 + $0x18] sm:$0xff] %v401_v34 }
  0xfc   : > { %v433_v35 = vld [vmem:[%s223_s26] sm:$0xff] }
  0xfd   : > { %434 = vst [vmem:[%s420_s29] sm:$0xff] %v433_v35 }
  0xfe   : > { %v435_v36 = vld [vmem:[%s223_s26 + $0x8] sm:$0xff] }
  0xff   : > { %436 = vst [vmem:[%s420_s29 + $0x8] sm:$0xff] %v435_v36 }
 0x100   : > { %v437_v37 = vld [vmem:[%s223_s26 + $0x10] sm:$0xff] }
 0x101   : > { %438 = vst [vmem:[%s420_s29 + $0x20] sm:$0xff] %v437_v37 }
 0x102   : > { %v439_v38 = vld [vmem:[%s223_s26 + $0x18] sm:$0xff] }
 0x103   : > { %440 = vst [vmem:[%s420_s29 + $0x28] sm:$0xff] %v439_v38 }
 0x104 PF: > { %s13_s16 = sadd.s32 1, %s679_s16   ;;  %s828_s12 = smov %s667_s13 }
 0x105   : > { %p10_p9 = scmp.ge.s32.totalorder %s13_s16, 4   ;;  %s829_s13 = smov %s743_s22 }
 0x106   : > { %s830_s14 = smov %s675_s15  ;;  %s831_s15 = smov %s833_s18 }
 0x107   :  { %12 = sbr.rel (!%p10_p9) target bundleno = 3 (0x3), region = 91 }

// kernel: forward.3
= control target key start
LH: loop header
LB: loop body
LE: loop exit
PB: predicated region body
PF: predicated region fallthrough
CT: control target
= control target key end

     0   :  { %19 = vsyncpa [#allocation3], 0  ;;  %s2393_s29 = smov 0   ;;  %s2744_s0 = inlined_call_operand.vmem [shape: f32[2,16,128], index: 0, kind: input, shape index: {}]   ;;  %s2745_s1 = inlined_call_operand.vmem [shape: f32[1,16,128], index: 1, kind: input, shape index: {}]   ;;  %s2746_s2 = inlined_call_operand.vmem [shape: bf16[128,384], index: 2, kind: input, shape index: {}]   ;;  %s2747_s3 = inlined_call_operand.vmem [shape: f32[1,384], index: 3, kind: input, shape index: {}]   ;;  %s2748_s4 = inlined_call_operand.vmem [shape: bf16[128,128], index: 4, kind: input, shape index: {}]   ;;  %s2749_s5 = inlined_call_operand.vmem [shape: f32[1,128], index: 5, kind: input, shape index: {}]   ;;  %s2750_s6 = inlined_call_operand.vmem [shape: bf16[128,256], index: 6, kind: input, shape index: {}]   ;;  %s2751_s7 = inlined_call_operand.vmem [shape: f32[1,256], index: 7, kind: input, shape index: {}]   ;;  %s2752_s8 = inlined_call_operand.hbm [shape: bf16[256,128], index: 8, kind: input, shape index: {}]   ;;  %s2753_s9 = inlined_call_operand.vmem [shape: f32[1,128], index: 9, kind: input, shape index: {}]   ;;  %s2754_s10 = inlined_call_operand.vmem [shape: f32[1,128], index: 10, kind: input, shape index: {}]   ;;  %s2755_s11 = inlined_call_operand.vmem [shape: f32[1,128], index: 11, kind: input, shape index: {}]   ;;  %s2756_s12 = inlined_call_operand.vmem [shape: f32[1,128], index: 12, kind: input, shape index: {}]   ;;  %s2757_s13 = inlined_call_operand.vmem [shape: f32[1,128], index: 13, kind: input, shape index: {}]   ;;  %s2758_s14 = inlined_call_operand.vmem [shape: f32[2,16,128], index: 14, kind: output, shape index: {}]  }
   0x1 LB: > { %s2399_s30 = sadd.s32 4294967295, %s2307_s29   ;;  %p1874_p0 = scmp.ge.s32.totalorder %s2307_s29, 1  ;;  %s2307_s29 = sphi %s2393_s29, %s25_s29  }
   0x2   : > { %p355_p1 = scmp.lt.s32.totalorder %s2307_s29, 3  ;;  %s2309_s15 = smov [#allocation2]  }
   0x3   : > { %s388_s16 = sshll.u32 %s2309_s15, 4  ;;  %p2117_p3 = scmp.eq.s32.totalorder %s2399_s30, 0  ;;  %s389_s16 = int_to_ptr.vmem [resolvable:$true] %s388_s16 }
   0x4   : > { %p2403_p2 = pnand %p1874_p0, %p355_p1  ;;  %s2282_s18 = scalar_lea.vmem %s389_s16, 2048 }
   0x5   : > { %p2283_p7 = scmp.ne.s32.totalorder %s389_s16, %s2282_s18  ;;  %p2290_p10 = scmp.lt.s32.totalorder %s389_s16, %s389_s16 }
   0x6   : > { %p2113_p4 = pneg %p2403_p2  ;;  %p2291_p11 = scmp.lt.s32.totalorder %s2282_s18, %s2282_s18 }
   0x8   : > { %p2114_p5 = pnand %p2117_p3, %p2113_p4  ;;  %p2292_p12 = por %p2291_p11, %p2290_p10 }
   0xa   : > { %p2273_p6 = pneg %p2114_p5 }
   0xc   : > { %p2285_p8 = pnand %p2283_p7, %p2273_p6 }
   0xe   : > { %p2286_p9 = pneg %p2285_p8 }
  0x10   : > { %p2293_p13 = pnand %p2292_p12, %p2286_p9 }
  0x12   : > { %2296 = shalt.err (!%p2293_p13)
}
  0x13   : > { %s2310_s19 = smov 64   ;;  %s2311_s20 = smov 4  }
  0x14   : > { %2116 = dma.hbm_to_vmem [thread:$0]  (!%p2114_p5), %s2752_s8, 2048, %s389_s16, [#allocation3], %s2310_s19, %s2310_s19, %s2311_s20  }
  0x15   : > { %427 = sbr.rel (%p2403_p2) target bundleno = 2877 (0xb3d), region = 76 }
  0x1a   : > { %2302 = dma.done.wait (%p2117_p3), [#allocation3], 2048  }
  0x1b   : > { %2304 = vsyncadd (%p2117_p3), [#allocation3], 4294965248  ;;  %v2312_v0 = vmov 0   ;;  %v2313_v1 = vmov 0.0   ;;  %v2151_v2 = vld [vmem:[%s2746_s2 + $0xac] ss:$12 sps:$4 sm:$0xff]   ;;  %v525_v33 = vlaneseq }
  0x1c   : > { %700 = vmatprep.mubr.bf16.mxu0 %v2312_v0  ;;  %2021 = vmatprep.subr.bf16.mxu1 %v2313_v1  ;;  %v2153_v3 = vld [vmem:[%s2746_s2 + $0xa8] ss:$12 sps:$4 sm:$0xff]   ;;  %v2156_v5 = vld [vmem:[%s2746_s2 + $0x90] ss:$12 sps:$4 sm:$0xff]   ;;  %p473_p0 = scmp.lt.s32.totalorder %s2399_s30, 1  ;;  %v486_v22 = vld [vmem:[%s2745_s1] sm:$0xff] }
  0x1d   : > { %668 = vmatprep.subr.bf16.mxu0 %v2151_v2  ;;  %v2154_v4 = vld [vmem:[%s2746_s2 + $0x94] ss:$12 sps:$4 sm:$0xff]   ;;  %v2157_v6 = vld [vmem:[%s2746_s2 + $0x7c] ss:$12 sps:$4 sm:$0xff]   ;;  %v2159_v7 = vld [vmem:[%s2746_s2 + $0x78] ss:$12 sps:$4 sm:$0xff]  }
  0x1e   : > { %669 = vmatpush1.bf16.msra.mxu0 %v2153_v3  ;;  %v2160_v8 = vld [vmem:[%s2746_s2 + $0x64] ss:$12 sps:$4 sm:$0xff]   ;;  %s2761_s30 = smov (!%p473_p0, %s2399_s30), 1  ;;  %v2162_v9 = vld [vmem:[%s2746_s2 + $0x60] ss:$12 sps:$4 sm:$0xff]   ;;  %vm2314_vm0 = vmmov 0  }
  0x1f   : > { %670 = vmatprep.subr.bf16.mxu0 %v2154_v4  ;;  %v2163_v10 = vld [vmem:[%s2746_s2 + $0x4c] ss:$12 sps:$4 sm:$0xff]   ;;  %v2175_v11 = vld [vmem:[%s2746_s2 + $0xb0] ss:$12 sps:$4 sm:$0xff]   ;;  %s1963_s15 = sshll.u32 %s2761_s30, 4  ;;  %2037 = vmatprep.mubr.msk.bf16.mxu1 %vm2314_vm0, %v2313_v1  ;;  %v2532_v34 = vshrl.u32 %v525_v33, 7 }
  0x20   : > { %2022 = vmatpush3.bf16.msra.mxu1 %v2175_v11  ;;  %v2176_v12 = vld [vmem:[%s2746_s2 + $0x98] ss:$12 sps:$4 sm:$0xff]   ;;  %v2165_v13 = vld [vmem:[%s2746_s2 + $0x48] ss:$12 sps:$4 sm:$0xff]   ;;  %v2168_v15 = vld [vmem:[%s2746_s2 + $0x30] ss:$12 sps:$4 sm:$0xff]   ;;  %s477_s26 = scalar_lea.vmem %s2744_s0, %s1963_s15  ;;  %s482_s19 = scalar_lea.vmem %s2758_s14, %s1963_s15 }
  0x21   : > { %2023 = vmatprep.subr.bf16.mxu1 %v2313_v1  ;;  %v2166_v14 = vld [vmem:[%s2746_s2 + $0x34] ss:$12 sps:$4 sm:$0xff]   ;;  %v2169_v17 = vld [vmem:[%s2746_s2 + $0x1c] ss:$12 sps:$4 sm:$0xff]   ;;  %v2171_v19 = vld [vmem:[%s2746_s2 + $0x18] ss:$12 sps:$4 sm:$0xff]  }
  0x22   : > { %671 = vmatpush1.bf16.msra.mxu0 %v2156_v5  ;;  %v2177_v16 = vld [vmem:[%s2746_s2 + $0x80] ss:$12 sps:$4 sm:$0xff]   ;;  %v2178_v18 = vld [vmem:[%s2746_s2 + $0x68] ss:$12 sps:$4 sm:$0xff]   ;;  %v2172_v24 = vld [vmem:[%s2746_s2 + $0x4] ss:$12 sps:$4 sm:$0xff]  }
  0x23   : > { %672 = vmatprep.subr.bf16.mxu0 %v2157_v6  ;;  %v484_v20 = vld [vmem:[%s477_s26] sm:$0xff]  ;;  %v485_v21 = vld [vmem:[%s477_s26 + $0x8] sm:$0xff]  ;;  %v2179_v25 = vld [vmem:[%s2746_s2 + $0x50] ss:$12 sps:$4 sm:$0xff]   ;;  %v531_v35 = vsub.s32 1, %v2532_v34  ;;  %v527_v39 = vsub.s32 0, %v2532_v34 }
  0x24   : > { %2024 = vmatpush3.bf16.msra.mxu1 %v2176_v12  ;;  %v487_v23 = vld [vmem:[%s2745_s1 + $0x8] sm:$0xff]  ;;  %v2505_v27 = vadd.f32 %v486_v22, %v484_v20  ;;  %v2180_v29 = vld [vmem:[%s2746_s2 + $0x38] ss:$12 sps:$4 sm:$0xff]   ;;  %v523_v37 = vld [vmem:[%s2747_s3] sm:$0x7]  ;;  %vm757_vm1 = vcmask 261120  }
  0x25   : > { %2025 = vmatprep.subr.bf16.mxu1 %v2313_v1  ;;  %v2174_v26 = vld [vmem:[%s2746_s2] ss:$12 sps:$4 sm:$0xff]   ;;  %v2507_v28 = vadd.f32 %v487_v23, %v485_v21  ;;  %v2182_v32 = vld [vmem:[%s2746_s2 + $0x8] ss:$12 sps:$4 sm:$0xff]   ;;  %v532_v40 = vrot.slane %v523_v37, %v531_v35  ;;  %v528_v43 = vrot.slane %v523_v37, %v527_v39  ;;  %v535_v53 = vsub.s32 2, %v2532_v34  ;;  %s2315_s28 = smov 96  }
  0x26   : > { %673 = vmatpush1.bf16.msra.mxu0 %v2159_v7  ;;  %v2181_v31 = vld [vmem:[%s2746_s2 + $0x20] ss:$12 sps:$4 sm:$0xff]   ;;  %vm805_vm2 = vcmask 130048   ;;  %s2316_s16 = smov 32   ;;  %s2317_s17 = smov 64   ;;  %vm1265_vm3 = vcmask 523264  }
  0x27   : > { %674 = vmatprep.subr.bf16.mxu0 %v2160_v8  ;;  %v490_v30 = vpack.c.bf16 %v2507_v28, %v2505_v27  ;;  %v536_v54 = vrot.slane %v523_v37, %v535_v53  ;;  %vm1268_vm4 = vcmask 785408   ;;  %v1942_v34 = vld [vmem:[%s2753_s9] ss:$0 sm:$0xff] }
  0x28   : > { %2026 = vmatpush3.bf16.msra.mxu1 %v2177_v16 }
  0x29   : > { %2027 = vmatprep.subr.bf16.mxu1 %v2313_v1 }
  0x2a   : > { %675 = vmatpush1.bf16.msra.mxu0 %v2162_v9 }
  0x2b   : > { %676 = vmatprep.subr.bf16.mxu0 %v2163_v10 }
  0x2c   : > { %2028 = vmatpush3.bf16.msra.mxu1 %v2178_v18 }
  0x2d   : > { %2029 = vmatprep.subr.bf16.mxu1 %v2313_v1 }
  0x2e   : > { %677 = vmatpush1.bf16.msra.mxu0 %v2165_v13 }
  0x2f   : > { %678 = vmatprep.subr.bf16.mxu0 %v2166_v14 }
  0x30   : > { %2030 = vmatpush3.bf16.msra.mxu1 %v2179_v25 }
  0x31   : > { %2031 = vmatprep.subr.bf16.mxu1 %v2313_v1 }
  0x32   : > { %679 = vmatpush1.bf16.msra.mxu0 %v2168_v15 }
  0x33   : > { %680 = vmatprep.subr.bf16.mxu0 %v2169_v17 }
  0x34   : > { %2032 = vmatpush3.bf16.msra.mxu1 %v2180_v29 }
  0x35   : > { %2033 = vmatprep.subr.bf16.mxu1 %v2313_v1 }
  0x36   : > { %681 = vmatpush1.bf16.msra.mxu0 %v2171_v19 }
  0x37   : > { %682 = vmatprep.subr.bf16.mxu0 %v2172_v24 }
  0x38   : > { %2034 = vmatpush3.bf16.msra.mxu1 %v2181_v31 }
  0x39   : > { %2035 = vmatprep.subr.bf16.mxu1 %v2313_v1 }
  0x3a   : > { %683 = vmatpush1.bf16.msra.mxu0 %v2174_v26 }
  0x3b   : > { %2065 = vmatprep.subr.bf16.mxu0 %v2313_v1 }
  0x3c   : > { %2036 = vmatpush3.bf16.msra.mxu1 %v2182_v32 }
  0x3d   : > { %701 = vmatmul.mubr.bf16.vlgmr.msra.gmra.mxu0 %v490_v30  ;;  %2041 = vmatprep.subr.bf16.mxu1 %v2313_v1 }
  0x3e   : > { %2067 = vmatprep.mubr.msk.bf16.mxu0 %vm2314_vm0, %v2313_v1 }
  0x3f   : > { %2038 = vmatmul.mubr.bf16.vlgmr.msra.gmra.mxu1 %v490_v30 }
  0x40   : > { %2043 = vmatprep.mubr.msk.bf16.mxu1 %vm2314_vm0, %v2313_v1 }
  0xfd   : > { %v702_v36 = vpop.f32.mrf.mxu0 }
  0xfe   : > { %v703_v48 = vadd.f32 %v702_v36, %v528_v43 }
  0xff   : > { %v704_v38 = vpop.f32.mrf.mxu0  ;;  %v745_v55 = vpop.f32.mrf.mxu1 }
 0x100   : > { %v705_v44 = vadd.f32 %v704_v38, %v532_v40  ;;  %v752_v51 = vmul.f32 0.17677669, %v703_v48  ;;  %v746_v57 = vadd.f32 %v745_v55, %v536_v54 }
 0x101   : > { %v706_v41 = vpop.f32.mrf.mxu0  ;;  %v2039_v56 = vpop.f32.mrf.mxu1 }
 0x102   : > { %v707_v46 = vadd.f32 %v706_v41, %v528_v43 }
 0x103   : > { %v708_v42 = vpop.f32.mrf.mxu0  ;;  %v748_v58 = vpop.f32.mrf.mxu1 }
 0x104   : > { %v709_v45 = vadd.f32 %v708_v42, %v532_v40  ;;  %v753_v50 = vmul.f32 0.17677669, %v707_v46  ;;  %v749_v59 = vadd.f32 %v748_v58, %v536_v54 }
 0x105   : > { %v2040_v60 = vpop.f32.mrf.mxu1 }
 0x106   : > { %v755_v47 = vpack.c.bf16 %v709_v45, %v705_v44  ;;  %v754_v52 = vpack.c.bf16 %v753_v50, %v752_v51  ;;  %v2549_v61 = vpack.c.bf16 %v749_v59, %v746_v57 }
 0x108   : > { %v762_v49 = vsel %vm757_vm1, %v755_v47, 0 }
 0x109   : > { %2042 = vmatpush3.bf16.xpose.msra.mxu1 %v762_v49 }
 0x10a   : > { %2047 = vmatprep.subr.bf16.mxu1 %v2313_v1 }
 0x110   : > { %2044 = vmatmul.mubr.msk.bf16.vlgmr.msra.gmra.mxu1 %vm757_vm1, %v754_v52 }
 0x111   : > { %2049 = vmatprep.mubr.msk.bf16.mxu1 %vm2314_vm0, %v2313_v1  ;;  %2048 = vmatpush3.bf16.msra.mxu1 %v2549_v61 }
 0x112   : > { %2053 = vmatprep.subr.bf16.mxu1 %v2313_v1 }
 0x1d0   : > { %v798_v62 = vpop.f32.mrf.mxu1 }
 0x1d1   : > { %v806_v63 = vsel %vm805_vm2, %v798_v62, -inf }
 0x1d2   : > { %807 = vmax.xlane.f32.xlu0 %v806_v63  ;;  %v2045_v2 = vpop.f32.mrf.mxu1 }
 0x1d4   : > { %v801_v3 = vpop.f32.mrf.mxu1 }
 0x1d5   : > { %v809_v4 = vsel %vm805_vm2, %v801_v3, -inf }
 0x1d6   : > { %810 = vmax.xlane.f32.xlu0 %v809_v4  ;;  %v2046_v5 = vpop.f32.mrf.mxu1 }
 0x1ec   : > { %877 = vrot.lane.b32.xlu0 %v755_v47, %s2315_s28 }
 0x1f0   : > { %1120 = vrot.lane.b32.xlu0 %v755_v47, %s2316_s16 }
 0x25b   : > { %v808_v6 = vpop.xlane.xlu0 %807 }
 0x25c   : > { %v812_v7 = vsub.f32 %v798_v62, %v808_v6 }
 0x25e   : > { %v814_v8 = vmul.f32 1.442695, %v812_v7 }
 0x25f   : > { %v811_v9 = vpop.xlane.xlu0 %810 }
 0x260   : > { %2231 = vpow2.f32 %v814_v8  ;;  %v813_v10 = vsub.f32 %v801_v3, %v811_v9 }
 0x262   : > { %v816_v11 = vmul.f32 1.442695, %v813_v10 }
 0x263   : > { %v878_v19 = vpop.permute.xlu0 %877 }
 0x264   : > { %2233 = vpow2.f32 %v816_v11  ;;  %v883_v32 = vsel %vm757_vm1, %v878_v19, 0 }
 0x267   : > { %v1121_v24 = vpop.permute.xlu0 %1120 }
 0x268   : > { %v1126_v30 = vsel %vm757_vm1, %v1121_v24, 0 }
 0x26d   : > { %v2232_v12 = vpop.eup %2231 }
 0x26e   : > { %v818_v13 = vsel %vm805_vm2, %v2232_v12, 0.0 }
 0x26f   : > { %819 = vadd.xlane.f32.xlu1 %v818_v13 }
 0x271   : > { %v2234_v14 = vpop.eup %2233 }
 0x272   : > { %v821_v15 = vsel %vm805_vm2, %v2234_v14, 0.0 }
 0x273   : > { %822 = vadd.xlane.f32.xlu1 %v821_v15 }
 0x284   : > { %874 = vrot.lane.b32.xlu1 %v754_v52, %s2315_s28 }
 0x288   : > { %999 = vrot.lane.b32.xlu1 %v755_v47, %s2317_s17 }
 0x28c   : > { %997 = vrot.lane.b32.xlu1 %v754_v52, %s2317_s17 }
 0x290   : > { %1118 = vrot.lane.b32.xlu1 %v754_v52, %s2316_s16 }
 0x2f8   : > { %v820_v16 = vpop.xlane.xlu1 %819 }
 0x2f9   : > { %2235 = vrcp.f32 %v820_v16 }
 0x2fc   : > { %v823_v17 = vpop.xlane.xlu1 %822 }
 0x2fd   : > { %2237 = vrcp.f32 %v823_v17 }
 0x300   : > { %v875_v18 = vpop.permute.xlu1 %874 }
 0x304   : > { %v1000_v20 = vpop.permute.xlu1 %999 }
 0x305   : > { %v1005_v21 = vsel %vm757_vm1, %v1000_v20, 0 }
 0x306   : > { %2066 = vmatpush3.bf16.xpose.msra.mxu0 %v1005_v21  ;;  %v2236_v22 = vpop.eup %2235 }
 0x307   : > { %2077 = vmatprep.subr.bf16.mxu0 %v2313_v1  ;;  %v825_v25 = vmul.f32 %v2236_v22, %v2232_v12 }
 0x308   : > { %v998_v29 = vpop.permute.xlu1 %997 }
 0x30a   : > { %v2238_v23 = vpop.eup %2237 }
 0x30b   : > { %v827_v26 = vmul.f32 %v2238_v23, %v2234_v14 }
 0x30c   : > { %v1119_v33 = vpop.permute.xlu1 %1118 }
 0x30d   : > { %2068 = vmatmul.mubr.msk.bf16.vlgmr.msra.gmra.mxu0 %vm757_vm1, %v998_v29  ;;  %v828_v31 = vpack.c.bf16 %v827_v26, %v825_v25 }
 0x30e   : > { %2078 = vmatpush3.bf16.xpose.msra.mxu0 %v1126_v30  ;;  %2079 = vmatprep.mubr.msk.bf16.mxu0 %vm2314_vm0, %v2313_v1 }
 0x30f   : > { %2050 = vmatmul.mubr.msk.bf16.vlgmr.msra.gmra.mxu1 %vm805_vm2, %v828_v31  ;;  %2089 = vmatprep.subr.bf16.mxu0 %v2313_v1 }
 0x310   : > { %2054 = vmatpush3.bf16.xpose.msra.mxu1 %v883_v32  ;;  %2055 = vmatprep.mubr.msk.bf16.mxu1 %vm2314_vm0, %v2313_v1 }
 0x311   : > { %2059 = vmatprep.subr.bf16.mxu1 %v2313_v1 }
 0x315   : > { %2080 = vmatmul.mubr.msk.bf16.vlgmr.msra.gmra.mxu0 %vm757_vm1, %v1119_v33 }
 0x316   : > { %2105 = vmatprep.mubr.msk.bf16.mxu0 %vm2314_vm0, %v2313_v1 }
 0x317   : > { %2056 = vmatmul.mubr.msk.bf16.vlgmr.msra.gmra.mxu1 %vm757_vm1, %v875_v18 }
 0x318   : > { %2061 = vmatprep.mubr.msk.bf16.mxu1 %vm2314_vm0, %v2313_v1 }
 0x3cd   : > { %v1041_v36 = vpop.f32.mrf.mxu0 }
 0x3ce   : > { %v1048_v53 = vsel %vm805_vm2, %v1041_v36, -inf }
 0x3cf   : > { %v2581_v37 = vpop.f32.mrf.mxu1  ;;  %v2069_v38 = vpop.f32.mrf.mxu0 }
 0x3d1   : > { %v2051_v40 = vpop.f32.mrf.mxu1  ;;  %v1044_v41 = vpop.f32.mrf.mxu0 }
 0x3d2   : > { %v1051_v56 = vsel %vm805_vm2, %v1044_v41, -inf }
 0x3d3   : > { %v2583_v42 = vpop.f32.mrf.mxu1  ;;  %v2070_v43 = vpop.f32.mrf.mxu0 }
 0x3d5   : > { %v2052_v44 = vpop.f32.mrf.mxu1  ;;  %v1162_v45 = vpop.f32.mrf.mxu0 }
 0x3d6   : > { %v1169_v58 = vsel %vm805_vm2, %v1162_v45, -inf }
 0x3d7   : > { %v919_v46 = vpop.f32.mrf.mxu1  ;;  %v2081_v47 = vpop.f32.mrf.mxu0 }
 0x3d8   : > { %v926_v48 = vsel %vm805_vm2, %v919_v46, -inf }
 0x3d9   : > { %v1165_v49 = vpop.f32.mrf.mxu0  ;;  %927 = vmax.xlane.f32.xlu0 %v926_v48  ;;  %v2057_v50 = vpop.f32.mrf.mxu1 }
 0x3da   : > { %v1172_v57 = vsel %vm805_vm2, %v1165_v49, -inf }
 0x3db   : > { %v922_v51 = vpop.f32.mrf.mxu1  ;;  %v2082_v52 = vpop.f32.mrf.mxu0 }
 0x3dc   : > { %v929_v54 = vsel %vm805_vm2, %v922_v51, -inf }
 0x3dd   : > { %1049 = vmax.xlane.f32.xlu0 %v1048_v53  ;;  %930 = vmax.xlane.f32.xlu1 %v929_v54  ;;  %v2058_v55 = vpop.f32.mrf.mxu1 }
 0x3e1   : > { %1052 = vmax.xlane.f32.xlu0 %v1051_v56  ;;  %1173 = vmax.xlane.f32.xlu1 %v1172_v57 }
 0x3e5   : > { %1170 = vmax.xlane.f32.xlu0 %v1169_v58  ;;  %v2183_v58 = vld [vmem:[%s2748_s4 + $0x38] sm:$0xff]  }
 0x3e6   : > { %2090 = vmatpush3.bf16.msra.mxu0 %v2183_v58  ;;  %v2197_v58 = vld [vmem:[%s2750_s6 + $0x50] ss:$8 sps:$4 sm:$0xff]  }
 0x3e7   : > { %2091 = vmatprep.subr.bf16.mxu0 %v2313_v1 }
 0x462   : > { %v928_v59 = vpop.xlane.xlu0 %927 }
 0x463   : > { %v932_v7 = vsub.f32 %v919_v46, %v928_v59  ;;  %v2184_v59 = vld [vmem:[%s2748_s4 + $0x30] sm:$0xff]  }
 0x464   : > { %2092 = vmatpush3.bf16.msra.mxu0 %v2184_v59  ;;  %v2200_v59 = vld [vmem:[%s2750_s6 + $0x40] ss:$8 sps:$4 sm:$0xff]  }
 0x465   : > { %v934_v13 = vmul.f32 1.442695, %v932_v7  ;;  %2093 = vmatprep.subr.bf16.mxu0 %v2313_v1 }
 0x466   : > { %v1050_v60 = vpop.xlane.xlu0 %1049  ;;  %v931_v62 = vpop.xlane.xlu1 %930 }
 0x467   : > { %v1054_v63 = vsub.f32 %v1041_v36, %v1050_v60  ;;  %v933_v8 = vsub.f32 %v922_v51, %v931_v62  ;;  %v2185_v60 = vld [vmem:[%s2748_s4 + $0x28] sm:$0xff]   ;;  %v2187_v62 = vld [vmem:[%s2748_s4 + $0x18] sm:$0xff]  }
 0x468   : > { %2094 = vmatpush3.bf16.msra.mxu0 %v2185_v60  ;;  %v2202_v60 = vld [vmem:[%s2750_s6 + $0x44] ss:$8 sps:$4 sm:$0xff]  }
 0x469   : > { %v1056_v2 = vmul.f32 1.442695, %v1054_v63  ;;  %v936_v14 = vmul.f32 1.442695, %v933_v8  ;;  %2095 = vmatprep.subr.bf16.mxu0 %v2313_v1 }
 0x46a   : > { %v1053_v3 = vpop.xlane.xlu0 %1052  ;;  %v1174_v4 = vpop.xlane.xlu1 %1173 }
 0x46b   : > { %2239 = vpow2.f32 %v1056_v2  ;;  %v1055_v5 = vsub.f32 %v1044_v41, %v1053_v3  ;;  %v1176_v6 = vsub.f32 %v1165_v49, %v1174_v4  ;;  %v2188_v3 = vld [vmem:[%s2748_s4 + $0x10] sm:$0xff]  }
 0x46d   : > { %v1058_v9 = vmul.f32 1.442695, %v1055_v5  ;;  %v1179_v10 = vmul.f32 1.442695, %v1176_v6  ;;  %v2189_v6 = vld [vmem:[%s2748_s4 + $0x8] sm:$0xff]  }
 0x46e   : > { %v1171_v11 = vpop.xlane.xlu0 %1170 }
 0x46f   : > { %2241 = vpow2.f32 %v1058_v9  ;;  %v1175_v12 = vsub.f32 %v1162_v45, %v1171_v11 }
 0x470   : > { %2243 = vpow2.f32 %v1179_v10  ;;  %v2190_v10 = vld [vmem:[%s2748_s4] sm:$0xff]  }
 0x471   : > { %v1177_v15 = vmul.f32 1.442695, %v1175_v12 }
 0x473   : > { %2245 = vpow2.f32 %v1177_v15 }
 0x474   : > { %2247 = vpow2.f32 %v934_v13 }
 0x475   : > { %2249 = vpow2.f32 %v936_v14 }
 0x478   : > { %v2240_v16 = vpop.eup %2239 }
 0x479   : > { %v1060_v17 = vsel %vm805_vm2, %v2240_v16, 0.0 }
 0x47a   : > { %1061 = vadd.xlane.f32.xlu0 %v1060_v17 }
 0x47c   : > { %v2242_v18 = vpop.eup %2241 }
 0x47d   : > { %v1063_v19 = vsel %vm805_vm2, %v2242_v18, 0.0  ;;  %v2244_v20 = vpop.eup %2243 }
 0x47e   : > { %1064 = vadd.xlane.f32.xlu1 %v1063_v19  ;;  %v1184_v24 = vsel %vm805_vm2, %v2244_v20, 0.0 }
 0x480   : > { %v2246_v21 = vpop.eup %2245 }
 0x481   : > { %v2248_v22 = vpop.eup %2247  ;;  %v1181_v23 = vsel %vm805_vm2, %v2246_v21, 0.0 }
 0x482   : > { %v2250_v25 = vpop.eup %2249  ;;  %1182 = vadd.xlane.f32.xlu0 %v1181_v23  ;;  %1185 = vadd.xlane.f32.xlu1 %v1184_v24  ;;  %v938_v26 = vsel %vm805_vm2, %v2248_v22, 0.0 }
 0x483   : > { %v941_v29 = vsel %vm805_vm2, %v2250_v25, 0.0 }
 0x486   : > { %939 = vadd.xlane.f32.xlu0 %v938_v26  ;;  %942 = vadd.xlane.f32.xlu1 %v941_v29 }
 0x497   : > { %1071 = vrot.lane.b32.xlu1 %v2549_v61, %s2317_s17 }
 0x49b   : > { %1192 = vrot.lane.b32.xlu1 %v2549_v61, %s2316_s16 }
 0x49c   : > { %950 = vrot.lane.b32.xlu0 %v2549_v61, %s2315_s28 }
 0x503   : > { %v1062_v30 = vpop.xlane.xlu0 %1061 }
 0x507   : > { %v1065_v31 = vpop.xlane.xlu1 %1064 }
 0x50b   : > { %v1183_v32 = vpop.xlane.xlu0 %1182  ;;  %v1186_v33 = vpop.xlane.xlu1 %1185 }
 0x50f   : > { %v940_v36 = vpop.xlane.xlu0 %939  ;;  %v943_v38 = vpop.xlane.xlu1 %942 }
 0x510   : > { %2251 = vrcp.f32 %v940_v36 }
 0x511   : > { %2253 = vrcp.f32 %v943_v38 }
 0x512   : > { %2255 = vrcp.f32 %v1065_v31 }
 0x513   : > { %v951_v40 = vpop.permute.xlu0 %950  ;;  %2257 = vrcp.f32 %v1062_v30  ;;  %v1072_v47 = vpop.permute.xlu1 %1071 }
 0x514   : > { %2060 = vmatpush3.bf16.msra.mxu1 %v951_v40  ;;  %2259 = vrcp.f32 %v1183_v32  ;;  %v1915_v40 = vld [vmem:[%s2749_s5] ss:$0 sm:$0xff] }
 0x515   : > { %2071 = vmatprep.subr.bf16.mxu1 %v2313_v1  ;;  %2261 = vrcp.f32 %v1186_v33 }
 0x517   : > { %v1193_v54 = vpop.permute.xlu1 %1192 }
 0x51d   : > { %v2252_v41 = vpop.eup %2251 }
 0x51e   : > { %v2254_v43 = vpop.eup %2253  ;;  %v945_v44 = vmul.f32 %v2252_v41, %v2248_v22 }
 0x51f   : > { %v947_v61 = vmul.f32 %v2254_v43, %v2250_v25  ;;  %v2256_v46 = vpop.eup %2255 }
 0x520   : > { %v2258_v48 = vpop.eup %2257  ;;  %v1069_v49 = vmul.f32 %v2256_v46, %v2242_v18 }
 0x521   : > { %v948_v45 = vpack.c.bf16 %v947_v61, %v945_v44  ;;  %v1067_v50 = vmul.f32 %v2258_v48, %v2240_v16  ;;  %v2260_v51 = vpop.eup %2259  ;;  %v2193_v48 = vld [vmem:[%s2750_s6 + $0x74] ss:$8 sps:$4 sm:$0xff]  }
 0x522   : > { %v2262_v53 = vpop.eup %2261  ;;  %v1188_v55 = vmul.f32 %v2260_v51, %v2246_v21 }
 0x523   : > { %2062 = vmatmul.mubr.msk.bf16.vlgmr.msra.gmra.mxu1 %vm805_vm2, %v948_v45  ;;  %v1070_v52 = vpack.c.bf16 %v1069_v49, %v1067_v50  ;;  %v1190_v56 = vmul.f32 %v2262_v53, %v2244_v20 }
 0x524   : > { %2072 = vmatpush3.bf16.msra.mxu1 %v1072_v47  ;;  %2073 = vmatprep.mubr.msk.bf16.mxu1 %vm2314_vm0, %v2313_v1  ;;  %v2191_v47 = vld [vmem:[%s2750_s6 + $0x70] ss:$8 sps:$4 sm:$0xff]  }
 0x525   : > { %2083 = vmatprep.subr.bf16.mxu1 %v2313_v1  ;;  %v1191_v57 = vpack.c.bf16 %v1190_v56, %v1188_v55  ;;  %v2196_v55 = vld [vmem:[%s2750_s6 + $0x64] ss:$8 sps:$4 sm:$0xff]   ;;  %v2194_v56 = vld [vmem:[%s2750_s6 + $0x60] ss:$8 sps:$4 sm:$0xff]  }
 0x52b   : > { %2074 = vmatmul.mubr.msk.bf16.vlgmr.msra.gmra.mxu1 %vm805_vm2, %v1070_v52 }
 0x52c   : > { %2084 = vmatpush3.bf16.msra.mxu1 %v1193_v54  ;;  %2085 = vmatprep.mubr.msk.bf16.mxu1 %vm2314_vm0, %v2313_v1 }
 0x52d   : > { %1536 = vmatprep.subr.bf16.mxu1 %v2193_v48 }
 0x533   : > { %2086 = vmatmul.mubr.msk.bf16.vlgmr.msra.gmra.mxu1 %vm805_vm2, %v1191_v57  ;;  %v2199_v57 = vld [vmem:[%s2750_s6 + $0x54] ss:$8 sps:$4 sm:$0xff]  }
 0x534   : > { %1568 = vmatprep.mubr.bf16.mxu1 %v2312_v0  ;;  %v2186_v0 = vld [vmem:[%s2748_s4 + $0x20] sm:$0xff]   ;;  %1537 = vmatpush1.bf16.msra.mxu1 %v2191_v47 }
 0x535   : > { %2096 = vmatpush3.bf16.msra.mxu0 %v2186_v0  ;;  %1538 = vmatprep.subr.bf16.mxu1 %v2196_v55  ;;  %v2205_v0 = vld [vmem:[%s2750_s6 + $0x34] ss:$8 sps:$4 sm:$0xff]  }
 0x536   : > { %2097 = vmatprep.subr.bf16.mxu0 %v2313_v1 }
 0x538   : > { %1539 = vmatpush1.bf16.msra.mxu1 %v2194_v56 }
 0x539   : > { %2098 = vmatpush3.bf16.msra.mxu0 %v2187_v62  ;;  %1540 = vmatprep.subr.bf16.mxu1 %v2199_v57  ;;  %v2203_v62 = vld [vmem:[%s2750_s6 + $0x30] ss:$8 sps:$4 sm:$0xff]  }
 0x53a   : > { %2099 = vmatprep.subr.bf16.mxu0 %v2313_v1 }
 0x53c   : > { %1541 = vmatpush1.bf16.msra.mxu1 %v2197_v58 }
 0x53d   : > { %2100 = vmatpush3.bf16.msra.mxu0 %v2188_v3  ;;  %1542 = vmatprep.subr.bf16.mxu1 %v2202_v60  ;;  %v2211_v3 = vld [vmem:[%s2750_s6 + $0x14] ss:$8 sps:$4 sm:$0xff]  }
 0x53e   : > { %2101 = vmatprep.subr.bf16.mxu0 %v2313_v1 }
 0x540   : > { %1543 = vmatpush1.bf16.msra.mxu1 %v2200_v59 }
 0x541   : > { %2102 = vmatpush3.bf16.msra.mxu0 %v2189_v6  ;;  %1544 = vmatprep.subr.bf16.mxu1 %v2205_v0  ;;  %v2212_v6 = vld [vmem:[%s2750_s6] ss:$8 sps:$4 sm:$0xff]  }
 0x542   : > { %2103 = vmatprep.subr.bf16.mxu0 %v2313_v1 }
 0x544   : > { %1545 = vmatpush1.bf16.msra.mxu1 %v2203_v62 }
 0x545   : > { %2104 = vmatpush3.bf16.msra.mxu0 %v2190_v10  ;;  %v2218_v10 = vld [vmem:[#allocation2 + $0x30] sm:$0xff]  }
 0x5e3   : > { %v990_v63 = vpop.f32.mrf.mxu1 }
 0x5e5   : > { %v2063_v2 = vpop.f32.mrf.mxu1 }
 0x5e6   : > { %v2206_v2 = vld [vmem:[%s2750_s6 + $0x20] ss:$8 sps:$4 sm:$0xff]  }
 0x5e7   : > { %v993_v4 = vpop.f32.mrf.mxu1 }
 0x5e8   : > { %v2136_v5 = vpack.i.bf16 %v993_v4, %v990_v63  ;;  %v2208_v63 = vld [vmem:[%s2750_s6 + $0x24] ss:$8 sps:$4 sm:$0xff]   ;;  %v2209_v4 = vld [vmem:[%s2750_s6 + $0x10] ss:$8 sps:$4 sm:$0xff]  }
 0x5e9   : > { %v2064_v7 = vpop.f32.mrf.mxu1  ;;  %1546 = vmatprep.subr.bf16.mxu1 %v2208_v63 }
 0x5ea   : > { %2137 = vrot.lane.b32.xlu1 %v2136_v5, %s2316_s16  ;;  %1547 = vmatpush1.bf16.msra.mxu1 %v2206_v2  ;;  %v2214_v5 = vld [vmem:[%s2750_s6 + $0x4] ss:$8 sps:$4 sm:$0xff]   ;;  %v2215_v7 = vld [vmem:[#allocation2 + $0x78] sm:$0xff]  }
 0x5eb   : > { %v1111_v8 = vpop.f32.mrf.mxu1  ;;  %1548 = vmatprep.subr.bf16.mxu1 %v2211_v3  ;;  %1999 = vmatprep.subr.bf16.mxu0 %v2215_v7 }
 0x5ed   : > { %v2075_v9 = vpop.f32.mrf.mxu1 }
 0x5ee   : > { %1549 = vmatpush1.bf16.msra.mxu1 %v2209_v4  ;;  %v2217_v9 = vld [vmem:[#allocation2 + $0x70] sm:$0xff]  }
 0x5ef   : > { %v1114_v11 = vpop.f32.mrf.mxu1  ;;  %1550 = vmatprep.subr.bf16.mxu1 %v2214_v5 }
 0x5f0   : > { %v2141_v12 = vpack.i.bf16 %v1114_v11, %v1111_v8  ;;  %v2216_v8 = vld [vmem:[#allocation2 + $0x38] sm:$0xff]   ;;  %v2219_v11 = vld [vmem:[#allocation2 + $0x68] sm:$0xff]  }
 0x5f1   : > { %v2076_v13 = vpop.f32.mrf.mxu1 }
 0x5f2   : > { %2142 = vrot.lane.b32.xlu0 %v2141_v12, %s2317_s17  ;;  %1551 = vmatpush1.bf16.msra.mxu1 %v2212_v6  ;;  %v2220_v12 = vld [vmem:[#allocation2 + $0x28] sm:$0xff]   ;;  %v2221_v13 = vld [vmem:[#allocation2 + $0x60] sm:$0xff]  }
 0x5f3   : > { %v1232_v14 = vpop.f32.mrf.mxu1 }
 0x5f5   : > { %v2087_v15 = vpop.f32.mrf.mxu1 }
 0x5f6   : > { %v2223_v15 = vld [vmem:[#allocation2 + $0x58] sm:$0xff]  }
 0x5f7   : > { %v1235_v16 = vpop.f32.mrf.mxu1 }
 0x5f8   : > { %v2146_v17 = vpack.i.bf16 %v1235_v16, %v1232_v14  ;;  %v2222_v14 = vld [vmem:[#allocation2 + $0x20] sm:$0xff]   ;;  %v2224_v16 = vld [vmem:[#allocation2 + $0x18] sm:$0xff]  }
 0x5f9   : > { %v2088_v18 = vpop.f32.mrf.mxu1 }
 0x5fa   : > { %2147 = vrot.lane.b32.xlu1 %v2146_v17, %s2315_s28 }
 0x65c   : > { %v2138_v19 = vpop.permute.xlu1 %2137 }
 0x65d   : > { %v2140_v1 = vunpack.i.h.bf16 %v2138_v19  ;;  %v2139_v21 = vunpack.i.l.bf16 %v2138_v19 }
 0x65f   : > { %v1264_v25 = vsel %vm757_vm1, %v2583_v42, %v2140_v1  ;;  %v1263_v26 = vsel %vm757_vm1, %v2581_v37, %v2139_v21 }
 0x664   : > { %v2143_v20 = vpop.permute.xlu0 %2142 }
 0x665   : > { %v2145_v22 = vunpack.i.h.bf16 %v2143_v20  ;;  %v2144_v23 = vunpack.i.l.bf16 %v2143_v20 }
 0x667   : > { %v1267_v31 = vsel %vm1265_vm3, %v1264_v25, %v2145_v22  ;;  %v1266_v32 = vsel %vm1265_vm3, %v1263_v26, %v2144_v23 }
 0x66c   : > { %v2148_v24 = vpop.permute.xlu1 %2147 }
 0x66d   : > { %v2150_v29 = vunpack.i.h.bf16 %v2148_v24  ;;  %v2149_v30 = vunpack.i.l.bf16 %v2148_v24  ;;  %v1924_v24 = vld [vmem:[%s2754_s10] ss:$0 sm:$0xff] }
 0x66f   : > { %v1270_v33 = vsel %vm1268_vm4, %v1267_v31, %v2150_v29  ;;  %v1269_v36 = vsel %vm1268_vm4, %v1266_v32, %v2149_v30  ;;  %v1925_v30 = vld [vmem:[%s2755_s11] ss:$0 sm:$0xff] }
 0x670   : > { %v1271_v38 = vpack.c.bf16 %v1270_v33, %v1269_v36 }
 0x672   : > { %2106 = vmatmul.mubr.bf16.vlgmr.msra.gmra.mxu0 %v1271_v38  ;;  %v2225_v38 = vld [vmem:[#allocation2 + $0x50] sm:$0xff]  }
 0x673   : > { %2000 = vmatpush3.bf16.msra.mxu0 %v2216_v8 }
 0x674   : > { %2001 = vmatprep.subr.bf16.mxu0 %v2217_v9 }
 0x677   : > { %2002 = vmatpush3.bf16.msra.mxu0 %v2218_v10 }
 0x678   : > { %2003 = vmatprep.subr.bf16.mxu0 %v2219_v11 }
 0x67b   : > { %2004 = vmatpush3.bf16.msra.mxu0 %v2220_v12 }
 0x67c   : > { %2005 = vmatprep.subr.bf16.mxu0 %v2221_v13 }
 0x67f   : > { %2006 = vmatpush3.bf16.msra.mxu0 %v2222_v14 }
 0x680   : > { %2007 = vmatprep.subr.bf16.mxu0 %v2223_v15 }
 0x683   : > { %2008 = vmatpush3.bf16.msra.mxu0 %v2224_v16 }
 0x684   : > { %2009 = vmatprep.subr.bf16.mxu0 %v2225_v38 }
 0x732   : > { %v1377_v41 = vpop.f32.mrf.mxu0 }
 0x733   : > { %v1378_v43 = vadd.f32 %v1915_v40, %v1377_v41  ;;  %v2227_v41 = vld [vmem:[#allocation2 + $0x48] sm:$0xff]  }
 0x734   : > { %v2107_v44 = vpop.f32.mrf.mxu0 }
 0x735   : > { %v1384_v42 = vadd.f32 %v1378_v43, %v2505_v27  ;;  %v2228_v43 = vld [vmem:[#allocation2 + $0x8] sm:$0xff]   ;;  %v2229_v44 = vld [vmem:[#allocation2 + $0x40] sm:$0xff]  }
 0x736   : > { %v1380_v61 = vpop.f32.mrf.mxu0 }
 0x737   : > { %v1381_v45 = vadd.f32 %v1915_v40, %v1380_v61  ;;  %1386 = vadd.xlane.f32.xlu0 %v1384_v42  ;;  %v2226_v40 = vld [vmem:[#allocation2 + $0x10] sm:$0xff]   ;;  %v1444_v61 = vld [vmem:[%s2751_s7] sm:$0x3] }
 0x738   : > { %v2108_v37 = vpop.f32.mrf.mxu0  ;;  %2010 = vmatpush3.bf16.msra.mxu0 %v2226_v40 }
 0x739   : > { %v1385_v46 = vadd.f32 %v1381_v45, %v2507_v28  ;;  %2011 = vmatprep.subr.bf16.mxu0 %v2227_v41  ;;  %v1453_v37 = vrot.slane %v1444_v61, %v531_v35 }
 0x73b   : > { %1388 = vadd.xlane.f32.xlu1 %v1385_v46 }
 0x73c   : > { %2012 = vmatpush3.bf16.msra.mxu0 %v2228_v43 }
 0x73d   : > { %2013 = vmatprep.subr.bf16.mxu0 %v2229_v44 }
 0x7c0   : > { %v1387_v49 = vpop.xlane.xlu0 %1386 }
 0x7c1   : > { %v1391_v50 = vmul.f32 0.0078125, %v1387_v49 }
 0x7c3   : > { %v2662_v27 = vsub.f32 %v1384_v42, %v1391_v50  ;;  %v2230_v42 = vld [vmem:[#allocation2] sm:$0xff]  }
 0x7c4   : > { %v1389_v51 = vpop.xlane.xlu1 %1388  ;;  %2014 = vmatpush3.bf16.msra.mxu0 %v2230_v42 }
 0x7c5   : > { %v1392_v52 = vmul.f32 0.0078125, %v1389_v51  ;;  %v1395_v28 = vmul.f32 %v2662_v27, %v2662_v27 }
 0x7c7   : > { %v2666_v53 = vsub.f32 %v1385_v46, %v1392_v52  ;;  %1397 = vadd.xlane.f32.xlu0 %v1395_v28  ;;  %v1449_v46 = vrot.slane %v1444_v61, %v527_v39 }
 0x7c9   : > { %v1396_v54 = vmul.f32 %v2666_v53, %v2666_v53 }
 0x7cb   : > { %1399 = vadd.xlane.f32.xlu0 %v1396_v54 }
 0x850   : > { %v1398_v17 = vpop.xlane.xlu0 %1397 }
 0x851   : > { %v1401_v18 = vmul.f32 0.0078125, %v1398_v17 }
 0x853   : > { %v1403_v19 = vadd.f32 1e-05, %v1401_v18 }
 0x854   : > { %v1400_v20 = vpop.xlane.xlu0 %1399 }
 0x855   : > { %2263 = vrsqrt.f32 %v1403_v19  ;;  %v1402_v1 = vmul.f32 0.0078125, %v1400_v20  ;;  %v1959_v19 = vld [vmem:[%s2756_s12] ss:$0 sm:$0xff] }
 0x857   : > { %v1404_v21 = vadd.f32 1e-05, %v1402_v1  ;;  %v1960_v1 = vld [vmem:[%s2757_s13] ss:$0 sm:$0xff] }
 0x859   : > { %2265 = vrsqrt.f32 %v1404_v21 }
 0x862   : > { %v2264_v22 = vpop.eup %2263 }
 0x863   : > { %v1407_v23 = vmul.f32 %v2264_v22, %v2662_v27 }
 0x865   : > { %v1416_v29 = vmul.f32 %v1924_v24, %v1407_v23 }
 0x866   : > { %v2266_v25 = vpop.eup %2265 }
 0x867   : > { %v1408_v26 = vmul.f32 %v2266_v25, %v2666_v53  ;;  %v1425_v32 = vadd.f32 %v1925_v30, %v1416_v29 }
 0x869   : > { %v1417_v31 = vmul.f32 %v1924_v24, %v1408_v26 }
 0x86b   : > { %v1426_v33 = vadd.f32 %v1925_v30, %v1417_v31 }
 0x86d   : > { %v1427_v36 = vpack.c.bf16 %v1426_v33, %v1425_v32 }
 0x86f   : > { %1569 = vmatmul.mubr.bf16.vlgmr.msra.gmra.mxu1 %v1427_v36 }
 0x92f   : > { %v1570_v45 = vpop.f32.mrf.mxu1 }
 0x930   : > { %v1571_v27 = vadd.f32 %v1570_v45, %v1449_v46 }
 0x931   : > { %v1572_v47 = vpop.f32.mrf.mxu1 }
 0x932   : > { %v1573_v49 = vadd.f32 %v1572_v47, %v1453_v37  ;;  %v1579_v55 = vmax.f32 %v1571_v27, 0.0 }
 0x933   : > { %v1574_v48 = vpop.f32.mrf.mxu1 }
 0x934   : > { %v1575_v50 = vadd.f32 %v1574_v48, %v1449_v46  ;;  %v1580_v53 = vmax.f32 %v1573_v49, 0.0 }
 0x935   : > { %v1576_v51 = vpop.f32.mrf.mxu1 }
 0x936   : > { %v1577_v52 = vadd.f32 %v1576_v51, %v1453_v37  ;;  %v1581_v28 = vmax.f32 %v1575_v50, 0.0 }
 0x938   : > { %v1582_v54 = vmax.f32 %v1577_v52, 0.0  ;;  %v1583_v57 = vpack.c.bf16 %v1581_v28, %v1579_v55 }
 0x93a   : > { %v1584_v56 = vpack.c.bf16 %v1582_v54, %v1580_v53 }
 0x93c   : > { %1752 = vmatprep.mubr.bf16.mxu0 %v1584_v56 }
 0x93d   : > { %1753 = vmatmul.mubr.bf16.vlgmr.msra.gmra.mxu0 %v1583_v57 }
 0x9fd   : > { %v2015_v58 = vpop.f32.mrf.mxu0 }
 0x9ff   : > { %v2016_v35 = vpop.f32.mrf.mxu0 }
 0xa00   : > { %v2017_v39 = vadd.f32 %v2016_v35, %v2015_v58 }
 0xa01   : > { %v2018_v59 = vpop.f32.mrf.mxu0 }
 0xa02   : > { %v1755_v60 = vadd.f32 %v2017_v39, %v1942_v34 }
 0xa03   : > { %v2019_v0 = vpop.f32.mrf.mxu0 }
 0xa04   : > { %v2020_v62 = vadd.f32 %v2019_v0, %v2018_v59  ;;  %v1761_v63 = vadd.f32 %v1755_v60, %v1425_v32 }
 0xa06   : > { %v1758_v2 = vadd.f32 %v2020_v62, %v1942_v34  ;;  %1763 = vadd.xlane.f32.xlu0 %v1761_v63 }
 0xa08   : > { %v1762_v3 = vadd.f32 %v1758_v2, %v1426_v33 }
 0xa0a   : > { %1765 = vadd.xlane.f32.xlu1 %v1762_v3 }
 0xa8f   : > { %v1764_v4 = vpop.xlane.xlu0 %1763 }
 0xa90   : > { %v1767_v5 = vmul.f32 0.0078125, %v1764_v4 }
 0xa92   : > { %v1769_v6 = vsub.f32 %v1761_v63, %v1767_v5 }
 0xa93   : > { %v1766_v7 = vpop.xlane.xlu1 %1765 }
 0xa94   : > { %v1768_v8 = vmul.f32 0.0078125, %v1766_v7  ;;  %v1771_v9 = vmul.f32 %v1769_v6, %v1769_v6 }
 0xa96   : > { %v1770_v10 = vsub.f32 %v1762_v3, %v1768_v8  ;;  %1773 = vadd.xlane.f32.xlu0 %v1771_v9 }
 0xa98   : > { %v1772_v11 = vmul.f32 %v1770_v10, %v1770_v10 }
 0xa9a   : > { %1775 = vadd.xlane.f32.xlu1 %v1772_v11 }
 0xb1f   : > { %v1774_v12 = vpop.xlane.xlu0 %1773 }
 0xb20   : > { %v1777_v13 = vmul.f32 0.0078125, %v1774_v12 }
 0xb22   : > { %v1779_v14 = vadd.f32 1e-05, %v1777_v13 }
 0xb23   : > { %v1776_v15 = vpop.xlane.xlu1 %1775 }
 0xb24   : > { %2267 = vrsqrt.f32 %v1779_v14  ;;  %v1778_v16 = vmul.f32 0.0078125, %v1776_v15 }
 0xb26   : > { %v1780_v17 = vadd.f32 1e-05, %v1778_v16 }
 0xb28   : > { %2269 = vrsqrt.f32 %v1780_v17 }
 0xb31   : > { %v2268_v18 = vpop.eup %2267 }
 0xb32   : > { %v1783_v20 = vmul.f32 %v2268_v18, %v1769_v6 }
 0xb34   : > { %v1792_v21 = vmul.f32 %v1959_v19, %v1783_v20 }
 0xb35   : > { %v2270_v22 = vpop.eup %2269 }
 0xb36   : > { %v1801_v23 = vadd.f32 %v1960_v1, %v1792_v21  ;;  %v1784_v24 = vmul.f32 %v2270_v22, %v1770_v10 }
 0xb38   : > { %1803 = vst [vmem:[%s482_s19] sm:$0xff] %v1801_v23  ;;  %v1793_v25 = vmul.f32 %v1959_v19, %v1784_v24 }
 0xb3a   : > { %v1802_v26 = vadd.f32 %v1960_v1, %v1793_v25 }
 0xb3c   : > { %1804 = vst [vmem:[%s482_s19 + $0x8] sm:$0xff] %v1802_v26 }
 0xb3d PF: > { %s25_s29 = sadd.s32 1, %s2307_s29  }
 0xb3e   : > { %p22_p1 = scmp.ge.s32.totalorder %s25_s29, 4  }
 0xb40   :  { %24 = sbr.rel (!%p22_p1) target bundleno = 1 (0x1), region = 111 }
 0xb45   :  { %1826 = vsyncpa [#allocation3], 1 }
 0xb46   :  { %1828 = vsyncpa [#allocation3 + $0x1], 1 }

// kernel: forward.4
= control target key start
LH: loop header
LB: loop body
LE: loop exit
PB: predicated region body
PF: predicated region fallthrough
CT: control target
= control target key end

     0   :  { %s2282_s25 = smov 0   ;;  %s2653_s0 = inlined_call_operand.vmem [shape: f32[2,16,128], index: 0, kind: input, shape index: {}]   ;;  %s2654_s1 = inlined_call_operand.vmem [shape: bf16[128,384], index: 1, kind: input, shape index: {}]   ;;  %s2655_s2 = inlined_call_operand.vmem [shape: f32[1,384], index: 2, kind: input, shape index: {}]   ;;  %s2656_s3 = inlined_call_operand.vmem [shape: bf16[128,128], index: 3, kind: input, shape index: {}]   ;;  %s2657_s4 = inlined_call_operand.vmem [shape: f32[1,128], index: 4, kind: input, shape index: {}]   ;;  %s2658_s5 = inlined_call_operand.vmem [shape: bf16[128,256], index: 5, kind: input, shape index: {}]   ;;  %s2659_s6 = inlined_call_operand.vmem [shape: f32[1,256], index: 6, kind: input, shape index: {}]   ;;  %s2660_s7 = inlined_call_operand.vmem [shape: bf16[256,128], index: 7, kind: input, shape index: {}]   ;;  %s2661_s8 = inlined_call_operand.vmem [shape: f32[1,128], index: 8, kind: input, shape index: {}]   ;;  %s2662_s9 = inlined_call_operand.vmem [shape: f32[1,128], index: 9, kind: input, shape index: {}]   ;;  %s2663_s10 = inlined_call_operand.vmem [shape: f32[1,128], index: 10, kind: input, shape index: {}]   ;;  %s2664_s11 = inlined_call_operand.vmem [shape: f32[1,128], index: 11, kind: input, shape index: {}]   ;;  %s2665_s12 = inlined_call_operand.vmem [shape: f32[1,128], index: 12, kind: input, shape index: {}]   ;;  %s2666_s13 = inlined_call_operand.vmem [shape: f32[2,16,128], index: 13, kind: output, shape index: {}]  }
   0x1 LB: > { %s1814_s26 = sadd.s32 4294967295, %s2204_s25   ;;  %p1818_p0 = scmp.ge.s32.totalorder %s2204_s25, 1  ;;  %s2204_s25 = sphi %s2282_s25, %s23_s25  }
   0x2   : > { %p387_p1 = scmp.lt.s32.totalorder %s2204_s25, 3 }
   0x4   : > { %p388_p2 = pnand %p1818_p0, %p387_p1 }
   0x5   : > { %p431_p3 = scmp.lt.s32.totalorder (!%p388_p2), %s1814_s26, 1  ;;  %s2209_s21 = smov (!%p388_p2), 96  }
   0x6   : > { %391 = sbr.rel (%p388_p2) target bundleno = 2860 (0xb2c), region = 72  ;;  %s2211_s23 = smov (!%p388_p2), 64  }
   0xb   : > { %v2078_v0 = vld [vmem:[%s2654_s1 + $0xac] ss:$12 sps:$4 sm:$0xff]   ;;  %v2080_v1 = vld [vmem:[%s2654_s1 + $0xa8] ss:$12 sps:$4 sm:$0xff]   ;;  %v2206_v2 = vmov 0   ;;  %v2207_v4 = vmov 0.0   ;;  %v479_v29 = vlaneseq }
   0xc   : > { %654 = vmatprep.mubr.bf16.mxu0 %v2206_v2  ;;  %622 = vmatprep.subr.bf16.mxu0 %v2078_v0  ;;  %v2081_v3 = vld [vmem:[%s2654_s1 + $0x94] ss:$12 sps:$4 sm:$0xff]   ;;  %v2083_v5 = vld [vmem:[%s2654_s1 + $0x90] ss:$12 sps:$4 sm:$0xff]   ;;  %v2086_v7 = vld [vmem:[%s2654_s1 + $0x78] ss:$12 sps:$4 sm:$0xff]  }
   0xd   : > { %1961 = vmatprep.subr.bf16.mxu1 %v2207_v4  ;;  %623 = vmatpush1.bf16.msra.mxu0 %v2080_v1  ;;  %v2084_v6 = vld [vmem:[%s2654_s1 + $0x7c] ss:$12 sps:$4 sm:$0xff]   ;;  %v2087_v8 = vld [vmem:[%s2654_s1 + $0x64] ss:$12 sps:$4 sm:$0xff]   ;;  %s2668_s26 = smov (!%p431_p3, %s1814_s26), 1  ;;  %vm2208_vm0 = vmmov 0  }
   0xe   : > { %624 = vmatprep.subr.bf16.mxu0 %v2081_v3  ;;  %v2089_v9 = vld [vmem:[%s2654_s1 + $0x60] ss:$12 sps:$4 sm:$0xff]   ;;  %v2102_v11 = vld [vmem:[%s2654_s1 + $0xb0] ss:$12 sps:$4 sm:$0xff]   ;;  %s1903_s15 = sshll.u32 %s2668_s26, 4  ;;  %1977 = vmatprep.mubr.msk.bf16.mxu1 %vm2208_vm0, %v2207_v4  ;;  %v2393_v30 = vshrl.u32 %v479_v29, 7 }
   0xf   : > { %v2090_v10 = vld [vmem:[%s2654_s1 + $0x4c] ss:$12 sps:$4 sm:$0xff]   ;;  %1962 = vmatpush3.bf16.msra.mxu1 %v2102_v11  ;;  %v2092_v13 = vld [vmem:[%s2654_s1 + $0x48] ss:$12 sps:$4 sm:$0xff]   ;;  %v2095_v15 = vld [vmem:[%s2654_s1 + $0x30] ss:$12 sps:$4 sm:$0xff]   ;;  %s435_s22 = scalar_lea.vmem %s2653_s0, %s1903_s15  ;;  %s440_s27 = scalar_lea.vmem %s2666_s13, %s1903_s15 }
  0x10   : > { %v2103_v12 = vld [vmem:[%s2654_s1 + $0x98] ss:$12 sps:$4 sm:$0xff]   ;;  %1963 = vmatprep.subr.bf16.mxu1 %v2207_v4  ;;  %v2093_v14 = vld [vmem:[%s2654_s1 + $0x34] ss:$12 sps:$4 sm:$0xff]   ;;  %v2096_v16 = vld [vmem:[%s2654_s1 + $0x1c] ss:$12 sps:$4 sm:$0xff]  }
  0x11   : > { %625 = vmatpush1.bf16.msra.mxu0 %v2083_v5  ;;  %v2104_v17 = vld [vmem:[%s2654_s1 + $0x80] ss:$12 sps:$4 sm:$0xff]   ;;  %v2105_v18 = vld [vmem:[%s2654_s1 + $0x68] ss:$12 sps:$4 sm:$0xff]   ;;  %v2098_v19 = vld [vmem:[%s2654_s1 + $0x18] ss:$12 sps:$4 sm:$0xff]  }
  0x12   : > { %626 = vmatprep.subr.bf16.mxu0 %v2084_v6  ;;  %v2099_v20 = vld [vmem:[%s2654_s1 + $0x4] ss:$12 sps:$4 sm:$0xff]   ;;  %v2101_v22 = vld [vmem:[%s2654_s1] ss:$12 sps:$4 sm:$0xff]   ;;  %v2109_v28 = vld [vmem:[%s2654_s1 + $0x8] ss:$12 sps:$4 sm:$0xff]  }
  0x13   : > { %1964 = vmatpush3.bf16.msra.mxu1 %v2103_v12  ;;  %v2106_v21 = vld [vmem:[%s2654_s1 + $0x50] ss:$12 sps:$4 sm:$0xff]   ;;  %v2366_v23 = vld [vmem:[%s435_s22] sm:$0xff]  ;;  %v2368_v24 = vld [vmem:[%s435_s22 + $0x8] sm:$0xff]  ;;  %v485_v31 = vsub.s32 1, %v2393_v30  ;;  %v481_v35 = vsub.s32 0, %v2393_v30 }
  0x14   : > { %1965 = vmatprep.subr.bf16.mxu1 %v2207_v4  ;;  %v2107_v25 = vld [vmem:[%s2654_s1 + $0x38] ss:$12 sps:$4 sm:$0xff]   ;;  %v444_v26 = vpack.c.bf16 %v2368_v24, %v2366_v23  ;;  %v2108_v27 = vld [vmem:[%s2654_s1 + $0x20] ss:$12 sps:$4 sm:$0xff]   ;;  %vm711_vm1 = vcmask 261120   ;;  %v489_v49 = vsub.s32 2, %v2393_v30 }
  0x15   : > { %627 = vmatpush1.bf16.msra.mxu0 %v2086_v7  ;;  %v477_v33 = vld [vmem:[%s2655_s2] sm:$0x7]  ;;  %vm759_vm2 = vcmask 130048   ;;  %s2210_s22 = smov 32   ;;  %vm1219_vm3 = vcmask 523264   ;;  %vm1222_vm4 = vcmask 785408  }
  0x16   : > { %628 = vmatprep.subr.bf16.mxu0 %v2087_v8  ;;  %v486_v36 = vrot.slane %v477_v33, %v485_v31  ;;  %v482_v39 = vrot.slane %v477_v33, %v481_v35  ;;  %v490_v50 = vrot.slane %v477_v33, %v489_v49  ;;  %v1882_v30 = vld [vmem:[%s2661_s8] ss:$0 sm:$0xff] }
  0x17   : > { %1966 = vmatpush3.bf16.msra.mxu1 %v2104_v17 }
  0x18   : > { %1967 = vmatprep.subr.bf16.mxu1 %v2207_v4 }
  0x19   : > { %629 = vmatpush1.bf16.msra.mxu0 %v2089_v9 }
  0x1a   : > { %630 = vmatprep.subr.bf16.mxu0 %v2090_v10 }
  0x1b   : > { %1968 = vmatpush3.bf16.msra.mxu1 %v2105_v18 }
  0x1c   : > { %1969 = vmatprep.subr.bf16.mxu1 %v2207_v4 }
  0x1d   : > { %631 = vmatpush1.bf16.msra.mxu0 %v2092_v13 }
  0x1e   : > { %632 = vmatprep.subr.bf16.mxu0 %v2093_v14 }
  0x1f   : > { %1970 = vmatpush3.bf16.msra.mxu1 %v2106_v21 }
  0x20   : > { %1971 = vmatprep.subr.bf16.mxu1 %v2207_v4 }
  0x21   : > { %633 = vmatpush1.bf16.msra.mxu0 %v2095_v15 }
  0x22   : > { %634 = vmatprep.subr.bf16.mxu0 %v2096_v16 }
  0x23   : > { %1972 = vmatpush3.bf16.msra.mxu1 %v2107_v25 }
  0x24   : > { %1973 = vmatprep.subr.bf16.mxu1 %v2207_v4 }
  0x25   : > { %635 = vmatpush1.bf16.msra.mxu0 %v2098_v19 }
  0x26   : > { %636 = vmatprep.subr.bf16.mxu0 %v2099_v20 }
  0x27   : > { %1974 = vmatpush3.bf16.msra.mxu1 %v2108_v27 }
  0x28   : > { %1975 = vmatprep.subr.bf16.mxu1 %v2207_v4 }
  0x29   : > { %637 = vmatpush1.bf16.msra.mxu0 %v2101_v22 }
  0x2a   : > { %2005 = vmatprep.subr.bf16.mxu0 %v2207_v4 }
  0x2b   : > { %1976 = vmatpush3.bf16.msra.mxu1 %v2109_v28 }
  0x2c   : > { %655 = vmatmul.mubr.bf16.vlgmr.msra.gmra.mxu0 %v444_v26  ;;  %1981 = vmatprep.subr.bf16.mxu1 %v2207_v4 }
  0x2d   : > { %2007 = vmatprep.mubr.msk.bf16.mxu0 %vm2208_vm0, %v2207_v4 }
  0x2e   : > { %1978 = vmatmul.mubr.bf16.vlgmr.msra.gmra.mxu1 %v444_v26 }
  0x2f   : > { %1983 = vmatprep.mubr.msk.bf16.mxu1 %vm2208_vm0, %v2207_v4 }
  0xec   : > { %v656_v32 = vpop.f32.mrf.mxu0 }
  0xed   : > { %v657_v44 = vadd.f32 %v656_v32, %v482_v39 }
  0xee   : > { %v658_v34 = vpop.f32.mrf.mxu0  ;;  %v699_v51 = vpop.f32.mrf.mxu1 }
  0xef   : > { %v659_v40 = vadd.f32 %v658_v34, %v486_v36  ;;  %v706_v47 = vmul.f32 0.17677669, %v657_v44  ;;  %v700_v53 = vadd.f32 %v699_v51, %v490_v50 }
  0xf0   : > { %v660_v37 = vpop.f32.mrf.mxu0  ;;  %v1979_v52 = vpop.f32.mrf.mxu1 }
  0xf1   : > { %v661_v42 = vadd.f32 %v660_v37, %v482_v39 }
  0xf2   : > { %v662_v38 = vpop.f32.mrf.mxu0  ;;  %v702_v54 = vpop.f32.mrf.mxu1 }
  0xf3   : > { %v663_v41 = vadd.f32 %v662_v38, %v486_v36  ;;  %v707_v46 = vmul.f32 0.17677669, %v661_v42  ;;  %v703_v55 = vadd.f32 %v702_v54, %v490_v50 }
  0xf4   : > { %v1980_v56 = vpop.f32.mrf.mxu1 }
  0xf5   : > { %v709_v43 = vpack.c.bf16 %v663_v41, %v659_v40  ;;  %v708_v48 = vpack.c.bf16 %v707_v46, %v706_v47  ;;  %v2410_v57 = vpack.c.bf16 %v703_v55, %v700_v53 }
  0xf7   : > { %v716_v45 = vsel %vm711_vm1, %v709_v43, 0 }
  0xf8   : > { %1982 = vmatpush3.bf16.xpose.msra.mxu1 %v716_v45 }
  0xf9   : > { %1987 = vmatprep.subr.bf16.mxu1 %v2207_v4 }
  0xff   : > { %1984 = vmatmul.mubr.msk.bf16.vlgmr.msra.gmra.mxu1 %vm711_vm1, %v708_v48 }
 0x100   : > { %1989 = vmatprep.mubr.msk.bf16.mxu1 %vm2208_vm0, %v2207_v4  ;;  %1988 = vmatpush3.bf16.msra.mxu1 %v2410_v57 }
 0x101   : > { %1993 = vmatprep.subr.bf16.mxu1 %v2207_v4 }
 0x1bf   : > { %v752_v58 = vpop.f32.mrf.mxu1 }
 0x1c0   : > { %v760_v59 = vsel %vm759_vm2, %v752_v58, -inf }
 0x1c1   : > { %761 = vmax.xlane.f32.xlu0 %v760_v59  ;;  %v1985_v60 = vpop.f32.mrf.mxu1 }
 0x1c3   : > { %v755_v61 = vpop.f32.mrf.mxu1 }
 0x1c4   : > { %v763_v62 = vsel %vm759_vm2, %v755_v61, -inf }
 0x1c5   : > { %764 = vmax.xlane.f32.xlu0 %v763_v62  ;;  %v1986_v63 = vpop.f32.mrf.mxu1 }
 0x1db   : > { %831 = vrot.lane.b32.xlu0 %v709_v43, %s2209_s21 }
 0x1df   : > { %1074 = vrot.lane.b32.xlu0 %v709_v43, %s2210_s22 }
 0x24a   : > { %v762_v0 = vpop.xlane.xlu0 %761 }
 0x24b   : > { %v766_v1 = vsub.f32 %v752_v58, %v762_v0 }
 0x24d   : > { %v768_v3 = vmul.f32 1.442695, %v766_v1 }
 0x24e   : > { %v765_v5 = vpop.xlane.xlu0 %764 }
 0x24f   : > { %2158 = vpow2.f32 %v768_v3  ;;  %v767_v6 = vsub.f32 %v755_v61, %v765_v5 }
 0x251   : > { %v770_v7 = vmul.f32 1.442695, %v767_v6 }
 0x252   : > { %v832_v15 = vpop.permute.xlu0 %831 }
 0x253   : > { %2160 = vpow2.f32 %v770_v7  ;;  %v837_v28 = vsel %vm711_vm1, %v832_v15, 0 }
 0x256   : > { %v1075_v20 = vpop.permute.xlu0 %1074 }
 0x257   : > { %v1080_v26 = vsel %vm711_vm1, %v1075_v20, 0 }
 0x25c   : > { %v2159_v8 = vpop.eup %2158 }
 0x25d   : > { %v772_v9 = vsel %vm759_vm2, %v2159_v8, 0.0 }
 0x25e   : > { %773 = vadd.xlane.f32.xlu1 %v772_v9 }
 0x260   : > { %v2161_v10 = vpop.eup %2160 }
 0x261   : > { %v775_v11 = vsel %vm759_vm2, %v2161_v10, 0.0 }
 0x262   : > { %776 = vadd.xlane.f32.xlu1 %v775_v11 }
 0x273   : > { %828 = vrot.lane.b32.xlu1 %v708_v48, %s2209_s21 }
 0x277   : > { %953 = vrot.lane.b32.xlu1 %v709_v43, %s2211_s23 }
 0x27b   : > { %951 = vrot.lane.b32.xlu1 %v708_v48, %s2211_s23 }
 0x27f   : > { %1072 = vrot.lane.b32.xlu1 %v708_v48, %s2210_s22 }
 0x2e7   : > { %v774_v12 = vpop.xlane.xlu1 %773 }
 0x2e8   : > { %2162 = vrcp.f32 %v774_v12 }
 0x2eb   : > { %v777_v13 = vpop.xlane.xlu1 %776 }
 0x2ec   : > { %2164 = vrcp.f32 %v777_v13 }
 0x2ef   : > { %v829_v14 = vpop.permute.xlu1 %828 }
 0x2f3   : > { %v954_v16 = vpop.permute.xlu1 %953 }
 0x2f4   : > { %v959_v17 = vsel %vm711_vm1, %v954_v16, 0 }
 0x2f5   : > { %2006 = vmatpush3.bf16.xpose.msra.mxu0 %v959_v17  ;;  %v2163_v18 = vpop.eup %2162 }
 0x2f6   : > { %2017 = vmatprep.subr.bf16.mxu0 %v2207_v4  ;;  %v779_v21 = vmul.f32 %v2163_v18, %v2159_v8 }
 0x2f7   : > { %v952_v25 = vpop.permute.xlu1 %951 }
 0x2f9   : > { %v2165_v19 = vpop.eup %2164 }
 0x2fa   : > { %v781_v22 = vmul.f32 %v2165_v19, %v2161_v10 }
 0x2fb   : > { %v1073_v29 = vpop.permute.xlu1 %1072 }
 0x2fc   : > { %2008 = vmatmul.mubr.msk.bf16.vlgmr.msra.gmra.mxu0 %vm711_vm1, %v952_v25  ;;  %v782_v27 = vpack.c.bf16 %v781_v22, %v779_v21 }
 0x2fd   : > { %2018 = vmatpush3.bf16.xpose.msra.mxu0 %v1080_v26  ;;  %2019 = vmatprep.mubr.msk.bf16.mxu0 %vm2208_vm0, %v2207_v4 }
 0x2fe   : > { %1990 = vmatmul.mubr.msk.bf16.vlgmr.msra.gmra.mxu1 %vm759_vm2, %v782_v27  ;;  %2029 = vmatprep.subr.bf16.mxu0 %v2207_v4 }
 0x2ff   : > { %1994 = vmatpush3.bf16.xpose.msra.mxu1 %v837_v28  ;;  %1995 = vmatprep.mubr.msk.bf16.mxu1 %vm2208_vm0, %v2207_v4 }
 0x300   : > { %1999 = vmatprep.subr.bf16.mxu1 %v2207_v4 }
 0x304   : > { %2020 = vmatmul.mubr.msk.bf16.vlgmr.msra.gmra.mxu0 %vm711_vm1, %v1073_v29 }
 0x305   : > { %2045 = vmatprep.mubr.msk.bf16.mxu0 %vm2208_vm0, %v2207_v4 }
 0x306   : > { %1996 = vmatmul.mubr.msk.bf16.vlgmr.msra.gmra.mxu1 %vm711_vm1, %v829_v14 }
 0x307   : > { %2001 = vmatprep.mubr.msk.bf16.mxu1 %vm2208_vm0, %v2207_v4 }
 0x3bc   : > { %v995_v32 = vpop.f32.mrf.mxu0 }
 0x3bd   : > { %v1002_v49 = vsel %vm759_vm2, %v995_v32, -inf }
 0x3be   : > { %v2442_v33 = vpop.f32.mrf.mxu1  ;;  %v2009_v34 = vpop.f32.mrf.mxu0 }
 0x3c0   : > { %v1991_v36 = vpop.f32.mrf.mxu1  ;;  %v998_v37 = vpop.f32.mrf.mxu0 }
 0x3c1   : > { %v1005_v52 = vsel %vm759_vm2, %v998_v37, -inf }
 0x3c2   : > { %v2444_v38 = vpop.f32.mrf.mxu1  ;;  %v2010_v39 = vpop.f32.mrf.mxu0 }
 0x3c4   : > { %v1992_v40 = vpop.f32.mrf.mxu1  ;;  %v1116_v41 = vpop.f32.mrf.mxu0 }
 0x3c5   : > { %v1123_v54 = vsel %vm759_vm2, %v1116_v41, -inf }
 0x3c6   : > { %v873_v42 = vpop.f32.mrf.mxu1  ;;  %v2021_v43 = vpop.f32.mrf.mxu0 }
 0x3c7   : > { %v880_v44 = vsel %vm759_vm2, %v873_v42, -inf }
 0x3c8   : > { %v1119_v45 = vpop.f32.mrf.mxu0  ;;  %881 = vmax.xlane.f32.xlu0 %v880_v44  ;;  %v1997_v46 = vpop.f32.mrf.mxu1 }
 0x3c9   : > { %v1126_v53 = vsel %vm759_vm2, %v1119_v45, -inf }
 0x3ca   : > { %v876_v47 = vpop.f32.mrf.mxu1  ;;  %v2022_v48 = vpop.f32.mrf.mxu0 }
 0x3cb   : > { %v883_v50 = vsel %vm759_vm2, %v876_v47, -inf }
 0x3cc   : > { %1003 = vmax.xlane.f32.xlu0 %v1002_v49  ;;  %884 = vmax.xlane.f32.xlu1 %v883_v50  ;;  %v1998_v51 = vpop.f32.mrf.mxu1 }
 0x3d0   : > { %1006 = vmax.xlane.f32.xlu0 %v1005_v52  ;;  %1127 = vmax.xlane.f32.xlu1 %v1126_v53 }
 0x3d4   : > { %1124 = vmax.xlane.f32.xlu0 %v1123_v54  ;;  %v2110_v54 = vld [vmem:[%s2656_s3 + $0x38] sm:$0xff]  }
 0x3d5   : > { %2030 = vmatpush3.bf16.msra.mxu0 %v2110_v54  ;;  %v2124_v54 = vld [vmem:[%s2658_s5 + $0x50] ss:$8 sps:$4 sm:$0xff]  }
 0x3d6   : > { %2031 = vmatprep.subr.bf16.mxu0 %v2207_v4 }
 0x451   : > { %v882_v55 = vpop.xlane.xlu0 %881 }
 0x452   : > { %v886_v1 = vsub.f32 %v873_v42, %v882_v55  ;;  %v2111_v55 = vld [vmem:[%s2656_s3 + $0x30] sm:$0xff]  }
 0x453   : > { %2032 = vmatpush3.bf16.msra.mxu0 %v2111_v55  ;;  %v2127_v55 = vld [vmem:[%s2658_s5 + $0x40] ss:$8 sps:$4 sm:$0xff]  }
 0x454   : > { %v888_v9 = vmul.f32 1.442695, %v886_v1  ;;  %2033 = vmatprep.subr.bf16.mxu0 %v2207_v4 }
 0x455   : > { %v1004_v56 = vpop.xlane.xlu0 %1003  ;;  %v885_v58 = vpop.xlane.xlu1 %884 }
 0x456   : > { %v1008_v59 = vsub.f32 %v995_v32, %v1004_v56  ;;  %v887_v3 = vsub.f32 %v876_v47, %v885_v58  ;;  %v2112_v56 = vld [vmem:[%s2656_s3 + $0x28] sm:$0xff]   ;;  %v2114_v58 = vld [vmem:[%s2656_s3 + $0x18] sm:$0xff]  }
 0x457   : > { %2034 = vmatpush3.bf16.msra.mxu0 %v2112_v56  ;;  %v2129_v56 = vld [vmem:[%s2658_s5 + $0x44] ss:$8 sps:$4 sm:$0xff]  }
 0x458   : > { %v1010_v60 = vmul.f32 1.442695, %v1008_v59  ;;  %v890_v10 = vmul.f32 1.442695, %v887_v3  ;;  %2035 = vmatprep.subr.bf16.mxu0 %v2207_v4 }
 0x459   : > { %v1007_v61 = vpop.xlane.xlu0 %1006  ;;  %v1128_v62 = vpop.xlane.xlu1 %1127 }
 0x45a   : > { %2166 = vpow2.f32 %v1010_v60  ;;  %v1009_v63 = vsub.f32 %v998_v37, %v1007_v61  ;;  %v1130_v0 = vsub.f32 %v1119_v45, %v1128_v62  ;;  %v2115_v61 = vld [vmem:[%s2656_s3 + $0x10] sm:$0xff]  }
 0x45c   : > { %v1012_v5 = vmul.f32 1.442695, %v1009_v63  ;;  %v1133_v6 = vmul.f32 1.442695, %v1130_v0  ;;  %v2116_v0 = vld [vmem:[%s2656_s3 + $0x8] sm:$0xff]  }
 0x45d   : > { %v1125_v7 = vpop.xlane.xlu0 %1124 }
 0x45e   : > { %2168 = vpow2.f32 %v1012_v5  ;;  %v1129_v8 = vsub.f32 %v1116_v41, %v1125_v7 }
 0x45f   : > { %2170 = vpow2.f32 %v1133_v6  ;;  %v2117_v6 = vld [vmem:[%s2656_s3] sm:$0xff]  }
 0x460   : > { %v1131_v11 = vmul.f32 1.442695, %v1129_v8 }
 0x462   : > { %2172 = vpow2.f32 %v1131_v11 }
 0x463   : > { %2174 = vpow2.f32 %v888_v9 }
 0x464   : > { %2176 = vpow2.f32 %v890_v10 }
 0x467   : > { %v2167_v12 = vpop.eup %2166 }
 0x468   : > { %v1014_v13 = vsel %vm759_vm2, %v2167_v12, 0.0 }
 0x469   : > { %1015 = vadd.xlane.f32.xlu0 %v1014_v13 }
 0x46b   : > { %v2169_v14 = vpop.eup %2168 }
 0x46c   : > { %v1017_v15 = vsel %vm759_vm2, %v2169_v14, 0.0  ;;  %v2171_v16 = vpop.eup %2170 }
 0x46d   : > { %1018 = vadd.xlane.f32.xlu1 %v1017_v15  ;;  %v1138_v20 = vsel %vm759_vm2, %v2171_v16, 0.0 }
 0x46f   : > { %v2173_v17 = vpop.eup %2172 }
 0x470   : > { %v2175_v18 = vpop.eup %2174  ;;  %v1135_v19 = vsel %vm759_vm2, %v2173_v17, 0.0 }
 0x471   : > { %v2177_v21 = vpop.eup %2176  ;;  %1136 = vadd.xlane.f32.xlu0 %v1135_v19  ;;  %1139 = vadd.xlane.f32.xlu1 %v1138_v20  ;;  %v892_v22 = vsel %vm759_vm2, %v2175_v18, 0.0 }
 0x472   : > { %v895_v25 = vsel %vm759_vm2, %v2177_v21, 0.0 }
 0x475   : > { %893 = vadd.xlane.f32.xlu0 %v892_v22  ;;  %896 = vadd.xlane.f32.xlu1 %v895_v25 }
 0x486   : > { %1025 = vrot.lane.b32.xlu1 %v2410_v57, %s2211_s23 }
 0x48a   : > { %1146 = vrot.lane.b32.xlu1 %v2410_v57, %s2210_s22 }
 0x48b   : > { %904 = vrot.lane.b32.xlu0 %v2410_v57, %s2209_s21 }
 0x4f2   : > { %v1016_v26 = vpop.xlane.xlu0 %1015 }
 0x4f6   : > { %v1019_v27 = vpop.xlane.xlu1 %1018 }
 0x4fa   : > { %v1137_v28 = vpop.xlane.xlu0 %1136  ;;  %v1140_v29 = vpop.xlane.xlu1 %1139 }
 0x4fe   : > { %v894_v32 = vpop.xlane.xlu0 %893  ;;  %v897_v34 = vpop.xlane.xlu1 %896 }
 0x4ff   : > { %2178 = vrcp.f32 %v894_v32 }
 0x500   : > { %2180 = vrcp.f32 %v897_v34 }
 0x501   : > { %2182 = vrcp.f32 %v1019_v27 }
 0x502   : > { %v905_v36 = vpop.permute.xlu0 %904  ;;  %2184 = vrcp.f32 %v1016_v26  ;;  %v1026_v43 = vpop.permute.xlu1 %1025 }
 0x503   : > { %2000 = vmatpush3.bf16.msra.mxu1 %v905_v36  ;;  %2186 = vrcp.f32 %v1137_v28  ;;  %v1855_v36 = vld [vmem:[%s2657_s4] ss:$0 sm:$0xff] }
 0x504   : > { %2011 = vmatprep.subr.bf16.mxu1 %v2207_v4  ;;  %2188 = vrcp.f32 %v1140_v29 }
 0x506   : > { %v1147_v50 = vpop.permute.xlu1 %1146 }
 0x50c   : > { %v2179_v37 = vpop.eup %2178 }
 0x50d   : > { %v2181_v39 = vpop.eup %2180  ;;  %v899_v40 = vmul.f32 %v2179_v37, %v2175_v18 }
 0x50e   : > { %v901_v57 = vmul.f32 %v2181_v39, %v2177_v21  ;;  %v2183_v42 = vpop.eup %2182 }
 0x50f   : > { %v2185_v44 = vpop.eup %2184  ;;  %v1023_v45 = vmul.f32 %v2183_v42, %v2169_v14 }
 0x510   : > { %v902_v41 = vpack.c.bf16 %v901_v57, %v899_v40  ;;  %v1021_v46 = vmul.f32 %v2185_v44, %v2167_v12  ;;  %v2187_v47 = vpop.eup %2186  ;;  %v2120_v44 = vld [vmem:[%s2658_s5 + $0x74] ss:$8 sps:$4 sm:$0xff]  }
 0x511   : > { %v2189_v49 = vpop.eup %2188  ;;  %v1142_v51 = vmul.f32 %v2187_v47, %v2173_v17 }
 0x512   : > { %2002 = vmatmul.mubr.msk.bf16.vlgmr.msra.gmra.mxu1 %vm759_vm2, %v902_v41  ;;  %v1024_v48 = vpack.c.bf16 %v1023_v45, %v1021_v46  ;;  %v1144_v52 = vmul.f32 %v2189_v49, %v2171_v16 }
 0x513   : > { %2012 = vmatpush3.bf16.msra.mxu1 %v1026_v43  ;;  %2013 = vmatprep.mubr.msk.bf16.mxu1 %vm2208_vm0, %v2207_v4  ;;  %v2118_v43 = vld [vmem:[%s2658_s5 + $0x70] ss:$8 sps:$4 sm:$0xff]  }
 0x514   : > { %2023 = vmatprep.subr.bf16.mxu1 %v2207_v4  ;;  %v1145_v53 = vpack.c.bf16 %v1144_v52, %v1142_v51  ;;  %v2123_v51 = vld [vmem:[%s2658_s5 + $0x64] ss:$8 sps:$4 sm:$0xff]   ;;  %v2121_v52 = vld [vmem:[%s2658_s5 + $0x60] ss:$8 sps:$4 sm:$0xff]  }
 0x51a   : > { %2014 = vmatmul.mubr.msk.bf16.vlgmr.msra.gmra.mxu1 %vm759_vm2, %v1024_v48 }
 0x51b   : > { %2024 = vmatpush3.bf16.msra.mxu1 %v1147_v50  ;;  %2025 = vmatprep.mubr.msk.bf16.mxu1 %vm2208_vm0, %v2207_v4 }
 0x51c   : > { %1490 = vmatprep.subr.bf16.mxu1 %v2120_v44 }
 0x522   : > { %2026 = vmatmul.mubr.msk.bf16.vlgmr.msra.gmra.mxu1 %vm759_vm2, %v1145_v53  ;;  %v2126_v53 = vld [vmem:[%s2658_s5 + $0x54] ss:$8 sps:$4 sm:$0xff]  }
 0x523   : > { %1522 = vmatprep.mubr.bf16.mxu1 %v2206_v2  ;;  %v2113_v2 = vld [vmem:[%s2656_s3 + $0x20] sm:$0xff]   ;;  %1491 = vmatpush1.bf16.msra.mxu1 %v2118_v43 }
 0x524   : > { %2036 = vmatpush3.bf16.msra.mxu0 %v2113_v2  ;;  %1492 = vmatprep.subr.bf16.mxu1 %v2123_v51  ;;  %v2132_v2 = vld [vmem:[%s2658_s5 + $0x34] ss:$8 sps:$4 sm:$0xff]  }
 0x525   : > { %2037 = vmatprep.subr.bf16.mxu0 %v2207_v4 }
 0x527   : > { %1493 = vmatpush1.bf16.msra.mxu1 %v2121_v52 }
 0x528   : > { %2038 = vmatpush3.bf16.msra.mxu0 %v2114_v58  ;;  %1494 = vmatprep.subr.bf16.mxu1 %v2126_v53  ;;  %v2130_v58 = vld [vmem:[%s2658_s5 + $0x30] ss:$8 sps:$4 sm:$0xff]  }
 0x529   : > { %2039 = vmatprep.subr.bf16.mxu0 %v2207_v4 }
 0x52b   : > { %1495 = vmatpush1.bf16.msra.mxu1 %v2124_v54 }
 0x52c   : > { %2040 = vmatpush3.bf16.msra.mxu0 %v2115_v61  ;;  %1496 = vmatprep.subr.bf16.mxu1 %v2129_v56  ;;  %v2138_v61 = vld [vmem:[%s2658_s5 + $0x14] ss:$8 sps:$4 sm:$0xff]  }
 0x52d   : > { %2041 = vmatprep.subr.bf16.mxu0 %v2207_v4 }
 0x52f   : > { %1497 = vmatpush1.bf16.msra.mxu1 %v2127_v55 }
 0x530   : > { %2042 = vmatpush3.bf16.msra.mxu0 %v2116_v0  ;;  %1498 = vmatprep.subr.bf16.mxu1 %v2132_v2  ;;  %v2139_v0 = vld [vmem:[%s2658_s5] ss:$8 sps:$4 sm:$0xff]  }
 0x531   : > { %2043 = vmatprep.subr.bf16.mxu0 %v2207_v4 }
 0x533   : > { %1499 = vmatpush1.bf16.msra.mxu1 %v2130_v58 }
 0x534   : > { %2044 = vmatpush3.bf16.msra.mxu0 %v2117_v6  ;;  %v2145_v6 = vld [vmem:[%s2660_s7 + $0x30] sm:$0xff]  }
 0x5d2   : > { %v944_v59 = vpop.f32.mrf.mxu1 }
 0x5d4   : > { %v2003_v60 = vpop.f32.mrf.mxu1 }
 0x5d5   : > { %v2133_v60 = vld [vmem:[%s2658_s5 + $0x20] ss:$8 sps:$4 sm:$0xff]  }
 0x5d6   : > { %v947_v62 = vpop.f32.mrf.mxu1 }
 0x5d7   : > { %v2063_v63 = vpack.i.bf16 %v947_v62, %v944_v59  ;;  %v2135_v59 = vld [vmem:[%s2658_s5 + $0x24] ss:$8 sps:$4 sm:$0xff]   ;;  %v2136_v62 = vld [vmem:[%s2658_s5 + $0x10] ss:$8 sps:$4 sm:$0xff]  }
 0x5d8   : > { %v2004_v1 = vpop.f32.mrf.mxu1  ;;  %1500 = vmatprep.subr.bf16.mxu1 %v2135_v59 }
 0x5d9   : > { %2064 = vrot.lane.b32.xlu1 %v2063_v63, %s2210_s22  ;;  %1501 = vmatpush1.bf16.msra.mxu1 %v2133_v60  ;;  %v2141_v63 = vld [vmem:[%s2658_s5 + $0x4] ss:$8 sps:$4 sm:$0xff]   ;;  %v2142_v1 = vld [vmem:[%s2660_s7 + $0x78] sm:$0xff]  }
 0x5da   : > { %v1065_v3 = vpop.f32.mrf.mxu1  ;;  %1502 = vmatprep.subr.bf16.mxu1 %v2138_v61  ;;  %1939 = vmatprep.subr.bf16.mxu0 %v2142_v1 }
 0x5dc   : > { %v2015_v5 = vpop.f32.mrf.mxu1 }
 0x5dd   : > { %1503 = vmatpush1.bf16.msra.mxu1 %v2136_v62  ;;  %v2144_v5 = vld [vmem:[%s2660_s7 + $0x70] sm:$0xff]  }
 0x5de   : > { %v1068_v7 = vpop.f32.mrf.mxu1  ;;  %1504 = vmatprep.subr.bf16.mxu1 %v2141_v63 }
 0x5df   : > { %v2068_v8 = vpack.i.bf16 %v1068_v7, %v1065_v3  ;;  %v2143_v3 = vld [vmem:[%s2660_s7 + $0x38] sm:$0xff]   ;;  %v2146_v7 = vld [vmem:[%s2660_s7 + $0x68] sm:$0xff]  }
 0x5e0   : > { %v2016_v9 = vpop.f32.mrf.mxu1 }
 0x5e1   : > { %2069 = vrot.lane.b32.xlu0 %v2068_v8, %s2211_s23  ;;  %1505 = vmatpush1.bf16.msra.mxu1 %v2139_v0  ;;  %v2147_v8 = vld [vmem:[%s2660_s7 + $0x28] sm:$0xff]   ;;  %v2148_v9 = vld [vmem:[%s2660_s7 + $0x60] sm:$0xff]  }
 0x5e2   : > { %v1186_v10 = vpop.f32.mrf.mxu1 }
 0x5e4   : > { %v2027_v11 = vpop.f32.mrf.mxu1 }
 0x5e5   : > { %v2150_v11 = vld [vmem:[%s2660_s7 + $0x58] sm:$0xff]  }
 0x5e6   : > { %v1189_v12 = vpop.f32.mrf.mxu1 }
 0x5e7   : > { %v2073_v13 = vpack.i.bf16 %v1189_v12, %v1186_v10  ;;  %v2149_v10 = vld [vmem:[%s2660_s7 + $0x20] sm:$0xff]   ;;  %v2151_v12 = vld [vmem:[%s2660_s7 + $0x18] sm:$0xff]  }
 0x5e8   : > { %v2028_v14 = vpop.f32.mrf.mxu1 }
 0x5e9   : > { %2074 = vrot.lane.b32.xlu1 %v2073_v13, %s2209_s21 }
 0x64b   : > { %v2065_v15 = vpop.permute.xlu1 %2064 }
 0x64c   : > { %v2067_v4 = vunpack.i.h.bf16 %v2065_v15  ;;  %v2066_v17 = vunpack.i.l.bf16 %v2065_v15 }
 0x64e   : > { %v1218_v21 = vsel %vm711_vm1, %v2444_v38, %v2067_v4  ;;  %v1217_v22 = vsel %vm711_vm1, %v2442_v33, %v2066_v17 }
 0x653   : > { %v2070_v16 = vpop.permute.xlu0 %2069 }
 0x654   : > { %v2072_v18 = vunpack.i.h.bf16 %v2070_v16  ;;  %v2071_v19 = vunpack.i.l.bf16 %v2070_v16 }
 0x656   : > { %v1221_v27 = vsel %vm1219_vm3, %v1218_v21, %v2072_v18  ;;  %v1220_v28 = vsel %vm1219_vm3, %v1217_v22, %v2071_v19 }
 0x65b   : > { %v2075_v20 = vpop.permute.xlu1 %2074 }
 0x65c   : > { %v2077_v25 = vunpack.i.h.bf16 %v2075_v20  ;;  %v2076_v26 = vunpack.i.l.bf16 %v2075_v20  ;;  %v1864_v20 = vld [vmem:[%s2662_s9] ss:$0 sm:$0xff] }
 0x65e   : > { %v1224_v29 = vsel %vm1222_vm4, %v1221_v27, %v2077_v25  ;;  %v1223_v32 = vsel %vm1222_vm4, %v1220_v28, %v2076_v26  ;;  %v1865_v26 = vld [vmem:[%s2663_s10] ss:$0 sm:$0xff] }
 0x65f   : > { %v1225_v34 = vpack.c.bf16 %v1224_v29, %v1223_v32 }
 0x661   : > { %2046 = vmatmul.mubr.bf16.vlgmr.msra.gmra.mxu0 %v1225_v34  ;;  %v2152_v34 = vld [vmem:[%s2660_s7 + $0x50] sm:$0xff]  }
 0x662   : > { %1940 = vmatpush3.bf16.msra.mxu0 %v2143_v3 }
 0x663   : > { %1941 = vmatprep.subr.bf16.mxu0 %v2144_v5 }
 0x666   : > { %1942 = vmatpush3.bf16.msra.mxu0 %v2145_v6 }
 0x667   : > { %1943 = vmatprep.subr.bf16.mxu0 %v2146_v7 }
 0x66a   : > { %1944 = vmatpush3.bf16.msra.mxu0 %v2147_v8 }
 0x66b   : > { %1945 = vmatprep.subr.bf16.mxu0 %v2148_v9 }
 0x66e   : > { %1946 = vmatpush3.bf16.msra.mxu0 %v2149_v10 }
 0x66f   : > { %1947 = vmatprep.subr.bf16.mxu0 %v2150_v11 }
 0x672   : > { %1948 = vmatpush3.bf16.msra.mxu0 %v2151_v12 }
 0x673   : > { %1949 = vmatprep.subr.bf16.mxu0 %v2152_v34 }
 0x721   : > { %v1331_v37 = vpop.f32.mrf.mxu0 }
 0x722   : > { %v1332_v39 = vadd.f32 %v1855_v36, %v1331_v37  ;;  %v2154_v37 = vld [vmem:[%s2660_s7 + $0x48] sm:$0xff]  }
 0x723   : > { %v2047_v40 = vpop.f32.mrf.mxu0 }
 0x724   : > { %v1338_v38 = vadd.f32 %v1332_v39, %v2366_v23  ;;  %v2155_v39 = vld [vmem:[%s2660_s7 + $0x8] sm:$0xff]   ;;  %v2156_v40 = vld [vmem:[%s2660_s7 + $0x40] sm:$0xff]  }
 0x725   : > { %v1334_v57 = vpop.f32.mrf.mxu0 }
 0x726   : > { %v1335_v41 = vadd.f32 %v1855_v36, %v1334_v57  ;;  %1340 = vadd.xlane.f32.xlu0 %v1338_v38  ;;  %v2153_v36 = vld [vmem:[%s2660_s7 + $0x10] sm:$0xff]   ;;  %v1398_v57 = vld [vmem:[%s2659_s6] sm:$0x3] }
 0x727   : > { %v2048_v33 = vpop.f32.mrf.mxu0  ;;  %1950 = vmatpush3.bf16.msra.mxu0 %v2153_v36 }
 0x728   : > { %v1339_v42 = vadd.f32 %v1335_v41, %v2368_v24  ;;  %1951 = vmatprep.subr.bf16.mxu0 %v2154_v37  ;;  %v1407_v33 = vrot.slane %v1398_v57, %v485_v31 }
 0x72a   : > { %1342 = vadd.xlane.f32.xlu1 %v1339_v42 }
 0x72b   : > { %1952 = vmatpush3.bf16.msra.mxu0 %v2155_v39 }
 0x72c   : > { %1953 = vmatprep.subr.bf16.mxu0 %v2156_v40 }
 0x7af   : > { %v1341_v45 = vpop.xlane.xlu0 %1340 }
 0x7b0   : > { %v1345_v46 = vmul.f32 0.0078125, %v1341_v45 }
 0x7b2   : > { %v2523_v23 = vsub.f32 %v1338_v38, %v1345_v46  ;;  %v2157_v38 = vld [vmem:[%s2660_s7] sm:$0xff]  }
 0x7b3   : > { %v1343_v47 = vpop.xlane.xlu1 %1342  ;;  %1954 = vmatpush3.bf16.msra.mxu0 %v2157_v38 }
 0x7b4   : > { %v1346_v48 = vmul.f32 0.0078125, %v1343_v47  ;;  %v1349_v24 = vmul.f32 %v2523_v23, %v2523_v23 }
 0x7b6   : > { %v2527_v49 = vsub.f32 %v1339_v42, %v1346_v48  ;;  %1351 = vadd.xlane.f32.xlu0 %v1349_v24  ;;  %v1403_v42 = vrot.slane %v1398_v57, %v481_v35 }
 0x7b8   : > { %v1350_v50 = vmul.f32 %v2527_v49, %v2527_v49 }
 0x7ba   : > { %1353 = vadd.xlane.f32.xlu0 %v1350_v50 }
 0x83f   : > { %v1352_v13 = vpop.xlane.xlu0 %1351 }
 0x840   : > { %v1355_v14 = vmul.f32 0.0078125, %v1352_v13 }
 0x842   : > { %v1357_v15 = vadd.f32 1e-05, %v1355_v14 }
 0x843   : > { %v1354_v16 = vpop.xlane.xlu0 %1353 }
 0x844   : > { %2190 = vrsqrt.f32 %v1357_v15  ;;  %v1356_v4 = vmul.f32 0.0078125, %v1354_v16  ;;  %v1899_v15 = vld [vmem:[%s2664_s11] ss:$0 sm:$0xff] }
 0x846   : > { %v1358_v17 = vadd.f32 1e-05, %v1356_v4  ;;  %v1900_v4 = vld [vmem:[%s2665_s12] ss:$0 sm:$0xff] }
 0x848   : > { %2192 = vrsqrt.f32 %v1358_v17 }
 0x851   : > { %v2191_v18 = vpop.eup %2190 }
 0x852   : > { %v1361_v19 = vmul.f32 %v2191_v18, %v2523_v23 }
 0x854   : > { %v1370_v25 = vmul.f32 %v1864_v20, %v1361_v19 }
 0x855   : > { %v2193_v21 = vpop.eup %2192 }
 0x856   : > { %v1362_v22 = vmul.f32 %v2193_v21, %v2527_v49  ;;  %v1379_v28 = vadd.f32 %v1865_v26, %v1370_v25 }
 0x858   : > { %v1371_v27 = vmul.f32 %v1864_v20, %v1362_v22 }
 0x85a   : > { %v1380_v29 = vadd.f32 %v1865_v26, %v1371_v27 }
 0x85c   : > { %v1381_v32 = vpack.c.bf16 %v1380_v29, %v1379_v28 }
 0x85e   : > { %1523 = vmatmul.mubr.bf16.vlgmr.msra.gmra.mxu1 %v1381_v32 }
 0x91e   : > { %v1524_v41 = vpop.f32.mrf.mxu1 }
 0x91f   : > { %v1525_v23 = vadd.f32 %v1524_v41, %v1403_v42 }
 0x920   : > { %v1526_v43 = vpop.f32.mrf.mxu1 }
 0x921   : > { %v1527_v45 = vadd.f32 %v1526_v43, %v1407_v33  ;;  %v1533_v51 = vmax.f32 %v1525_v23, 0.0 }
 0x922   : > { %v1528_v44 = vpop.f32.mrf.mxu1 }
 0x923   : > { %v1529_v46 = vadd.f32 %v1528_v44, %v1403_v42  ;;  %v1534_v49 = vmax.f32 %v1527_v45, 0.0 }
 0x924   : > { %v1530_v47 = vpop.f32.mrf.mxu1 }
 0x925   : > { %v1531_v48 = vadd.f32 %v1530_v47, %v1407_v33  ;;  %v1535_v24 = vmax.f32 %v1529_v46, 0.0 }
 0x927   : > { %v1536_v50 = vmax.f32 %v1531_v48, 0.0  ;;  %v1537_v53 = vpack.c.bf16 %v1535_v24, %v1533_v51 }
 0x929   : > { %v1538_v52 = vpack.c.bf16 %v1536_v50, %v1534_v49 }
 0x92b   : > { %1706 = vmatprep.mubr.bf16.mxu0 %v1538_v52 }
 0x92c   : > { %1707 = vmatmul.mubr.bf16.vlgmr.msra.gmra.mxu0 %v1537_v53 }
 0x9ec   : > { %v1955_v54 = vpop.f32.mrf.mxu0 }
 0x9ee   : > { %v1956_v31 = vpop.f32.mrf.mxu0 }
 0x9ef   : > { %v1957_v35 = vadd.f32 %v1956_v31, %v1955_v54 }
 0x9f0   : > { %v1958_v55 = vpop.f32.mrf.mxu0 }
 0x9f1   : > { %v1709_v56 = vadd.f32 %v1957_v35, %v1882_v30 }
 0x9f2   : > { %v1959_v2 = vpop.f32.mrf.mxu0 }
 0x9f3   : > { %v1960_v58 = vadd.f32 %v1959_v2, %v1958_v55  ;;  %v1715_v59 = vadd.f32 %v1709_v56, %v1379_v28 }
 0x9f5   : > { %v1712_v60 = vadd.f32 %v1960_v58, %v1882_v30  ;;  %1717 = vadd.xlane.f32.xlu0 %v1715_v59 }
 0x9f7   : > { %v1716_v61 = vadd.f32 %v1712_v60, %v1380_v29 }
 0x9f9   : > { %1719 = vadd.xlane.f32.xlu1 %v1716_v61 }
 0xa7e   : > { %v1718_v62 = vpop.xlane.xlu0 %1717 }
 0xa7f   : > { %v1721_v63 = vmul.f32 0.0078125, %v1718_v62 }
 0xa81   : > { %v1723_v0 = vsub.f32 %v1715_v59, %v1721_v63 }
 0xa82   : > { %v1720_v1 = vpop.xlane.xlu1 %1719 }
 0xa83   : > { %v1722_v3 = vmul.f32 0.0078125, %v1720_v1  ;;  %v1725_v5 = vmul.f32 %v1723_v0, %v1723_v0 }
 0xa85   : > { %v1724_v6 = vsub.f32 %v1716_v61, %v1722_v3  ;;  %1727 = vadd.xlane.f32.xlu0 %v1725_v5 }
 0xa87   : > { %v1726_v7 = vmul.f32 %v1724_v6, %v1724_v6 }
 0xa89   : > { %1729 = vadd.xlane.f32.xlu1 %v1726_v7 }
 0xb0e   : > { %v1728_v8 = vpop.xlane.xlu0 %1727 }
 0xb0f   : > { %v1731_v9 = vmul.f32 0.0078125, %v1728_v8 }
 0xb11   : > { %v1733_v10 = vadd.f32 1e-05, %v1731_v9 }
 0xb12   : > { %v1730_v11 = vpop.xlane.xlu1 %1729 }
 0xb13   : > { %2194 = vrsqrt.f32 %v1733_v10  ;;  %v1732_v12 = vmul.f32 0.0078125, %v1730_v11 }
 0xb15   : > { %v1734_v13 = vadd.f32 1e-05, %v1732_v12 }
 0xb17   : > { %2196 = vrsqrt.f32 %v1734_v13 }
 0xb20   : > { %v2195_v14 = vpop.eup %2194 }
 0xb21   : > { %v1737_v16 = vmul.f32 %v2195_v14, %v1723_v0 }
 0xb23   : > { %v1746_v17 = vmul.f32 %v1899_v15, %v1737_v16 }
 0xb24   : > { %v2197_v18 = vpop.eup %2196 }
 0xb25   : > { %v1755_v19 = vadd.f32 %v1900_v4, %v1746_v17  ;;  %v1738_v20 = vmul.f32 %v2197_v18, %v1724_v6 }
 0xb27   : > { %1757 = vst [vmem:[%s440_s27] sm:$0xff] %v1755_v19  ;;  %v1747_v21 = vmul.f32 %v1899_v15, %v1738_v20 }
 0xb29   : > { %v1756_v22 = vadd.f32 %v1900_v4, %v1747_v21 }
 0xb2b   : > { %1758 = vst [vmem:[%s440_s27 + $0x8] sm:$0xff] %v1756_v22 }
 0xb2c PF: > { %s23_s25 = sadd.s32 1, %s2204_s25  }
 0xb2d   : > { %p20_p4 = scmp.ge.s32.totalorder %s23_s25, 4  }
 0xb2f   :  { %22 = sbr.rel (!%p20_p4) target bundleno = 1 (0x1), region = 102 }

</bundles_post_ra>
